<compile_context>
chip_gen: v6e
topology: v6e:2x2x1
jax: 0.10.0
libtpu: 0.0.40
codegen_flags: <defaults>
</compile_context>

<pallas_src>
import jax
import jax.numpy as jnp
from jax.experimental import pallas as pl
from jax.experimental.pallas import tpu as pltpu

EPS = 1e-5  # nn.LayerNorm default eps


def duration_predictor_kernel(x_ref, w1_ref, w2_ref, pv_ref, bl_ref, out_ref):
    s_blk, _, t = out_ref.shape          # output block [S, 1, T]

    pv = pv_ref[...]                     # [F, 8] packed per-channel params
    b1, g1, be1 = pv[:, 0:1], pv[:, 1:2], pv[:, 2:3]
    b2, g2, be2 = pv[:, 3:4], pv[:, 4:5], pv[:, 5:6]
    wl = pv[:, 6:7]                      # Linear weight as an [F, 1] column
    bl = bl_ref[0, 0]                    # Linear bias scalar (SMEM)

    w1p, w1c, w1n = w1_ref[0], w1_ref[1], w1_ref[2]   # each [F, C_in]
    w2p, w2c, w2n = w2_ref[0], w2_ref[1], w2_ref[2]   # each [F, F]

    lane = jax.lax.broadcasted_iota(jnp.int32, (1, t), 1)
    first_col = lane == 0
    last_col = lane == (t - 1)

    def shift_prev(v):                   # v[:, t] <- v[:, t-1], zero at t == 0
        return jnp.where(first_col, 0.0, pltpu.roll(v, 1, axis=1))

    def shift_next(v):                   # v[:, t] <- v[:, t+1], zero at t == T-1
        return jnp.where(last_col, 0.0, pltpu.roll(v, t - 1, axis=1))

    def layer_norm_relu(h, g, be):       # LayerNorm over the channel sublanes
        mu = jnp.mean(h, axis=0, keepdims=True)          # two-pass statistics
        d = h - mu
        var = jnp.mean(d * d, axis=0, keepdims=True)
        hn = d * jax.lax.rsqrt(var + EPS)
        return jnp.maximum(hn * g + be, 0.0)

    for s in range(s_blk):               # static unroll over sequences in block
        x = x_ref[s]                     # [C_in, T]

        # ---- conv block 1: three shifted K=C_in matmuls, f32 accumulation ----
        h = (jnp.dot(w1c, x, preferred_element_type=jnp.float32)
             + jnp.dot(w1p, shift_prev(x), preferred_element_type=jnp.float32)
             + jnp.dot(w1n, shift_next(x), preferred_element_type=jnp.float32)
             + b1)
        h = layer_norm_relu(h, g1, be1)

        # ---- conv block 2 ----
        h2 = (jnp.dot(w2c, h, preferred_element_type=jnp.float32)
              + jnp.dot(w2p, shift_prev(h), preferred_element_type=jnp.float32)
              + jnp.dot(w2n, shift_next(h), preferred_element_type=jnp.float32)
              + b2)
        h2 = layer_norm_relu(h2, g2, be2)

        # ---- Linear(F -> 1): collapse channel sublanes -> lane-dense [1, T] ----
        out = jnp.sum(h2 * wl, axis=0, keepdims=True) + bl
        out_ref[s] = jnp.maximum(out, 0.0)


def _seqs_per_block(batch, seq_len, c_in):
    """Sequences per grid step: fold small batches into one step; otherwise keep
    input blocks around <= 2 MiB and enough grid steps for pipelining/megacore."""
    t_lanes = max(128, ((seq_len + 127) // 128) * 128)   # VMEM lane padding
    per_seq_bytes = 4 * c_in * t_lanes
    max_s = max(1, (2 * 1024 * 1024) // per_seq_bytes)
    s = min(batch, max_s, 8)                             # cap static unroll
    if batch > 8:
        s = min(s, max(1, batch // 8))                   # keep >= 8 grid steps
    while batch % s:                                     # uniform blocks only
        s -= 1
    return s


def duration_predictor(x, params):
    B, T, c_in = x.shape
    filt = params["g1"].shape[-1]

    # channels-on-sublanes / time-on-lanes layout (torch Conv1d native layout)
    x_bct = jnp.swapaxes(x, 1, 2)                         # [B, C_in, T]
    # per-tap conv weights as [3, C_out, C_in] (tap 0 -> x[t-1], tap 2 -> x[t+1])
    w1 = jnp.transpose(params["w1"], (0, 2, 1))           # [3, F, C_in]
    w2 = jnp.transpose(params["w2"], (0, 2, 1))           # [3, F, F]
    # per-channel params packed into one [F, 8] slab (column 7 unused)
    pv = jnp.stack([params["b1"][0], params["g1"][0], params["be1"][0],
                    params["b2"][0], params["g2"][0], params["be2"][0],
                    params["wl"][0], jnp.zeros((filt,), jnp.float32)], axis=1)
    bl = params["bl"]                                     # [1, 1] scalar (SMEM)

    S = _seqs_per_block(B, T, c_in)
    n_blocks = B // S

    # explicit (generous) scoped-VMEM limit; blocks are sized to stay well below
    t_lanes = max(128, ((T + 127) // 128) * 128)
    block_bytes = 4 * S * (c_in + 8) * t_lanes            # input + padded output
    act_bytes = 4 * 8 * max(filt, c_in) * t_lanes         # live [F, T] temporaries
    weight_bytes = 4 * (w1.size + w2.size + pv.size)
    vmem_limit = int(min(48 * 2**20,
                         max(8 * 2**20,
                             2 * block_bytes + act_bytes + weight_bytes + (2 << 20))))

    flops = 2 * B * T * (3 * c_in * filt + 3 * filt * filt + filt)
    bytes_accessed = 4 * (x.size + w1.size + w2.size + pv.size + bl.size + B * T)

    out = pl.pallas_call(
        duration_predictor_kernel,
        out_shape=jax.ShapeDtypeStruct((B, 1, T), jnp.float32),
        grid=(n_blocks,),
        in_specs=[
            pl.BlockSpec((S, c_in, T), lambda i: (i, 0, 0)),        # x block
            pl.BlockSpec((3, filt, c_in), lambda i: (0, 0, 0)),     # conv1 taps
            pl.BlockSpec((3, filt, filt), lambda i: (0, 0, 0)),     # conv2 taps
            pl.BlockSpec((filt, 8), lambda i: (0, 0)),              # packed params
            pl.BlockSpec(memory_space=pltpu.MemorySpace.SMEM),      # linear bias
        ],
        out_specs=pl.BlockSpec((S, 1, T), lambda i: (i, 0, 0)),
        compiler_params=pltpu.CompilerParams(
            dimension_semantics=("parallel",),
            vmem_limit_bytes=vmem_limit),
        cost_estimate=pl.CostEstimate(
            flops=flops, transcendentals=2 * B * T,
            bytes_accessed=bytes_accessed),
    )(x_bct, w1, w2, pv, bl)

    # TODO(synk): for extremely long sequences, additionally tile T (lane axis)
    # with a 1-column halo per conv so activations stay bounded in VMEM.
    out = out[:, 0, :]                                    # [B, T]
    # PyTorch eval path: out.squeeze() -> [B, T]; out.unsqueeze(0) -> [1, B, T]
    return out[None]


def duration_predictor_ref(x, p):
    """Pure-JAX reference (same math, no Pallas) for a sanity check."""
    hi = jax.lax.Precision.HIGHEST

    def conv3(h, w, b):
        zeros = jnp.zeros_like(h[:, :1, :])
        h_prev = jnp.concatenate([zeros, h[:, :-1, :]], axis=1)
        h_next = jnp.concatenate([h[:, 1:, :], zeros], axis=1)
        y = (jnp.einsum('btc,cf->btf', h_prev, w[0], precision=hi)
             + jnp.einsum('btc,cf->btf', h, w[1], precision=hi)
             + jnp.einsum('btc,cf->btf', h_next, w[2], precision=hi))
        return y + b[0]

    def ln(h, g, be):
        mu = jnp.mean(h, axis=-1, keepdims=True)
        var = jnp.mean((h - mu) ** 2, axis=-1, keepdims=True)
        return (h - mu) * jax.lax.rsqrt(var + EPS) * g[0] + be[0]

    h = jnp.maximum(ln(conv3(x, p["w1"], p["b1"]), p["g1"], p["be1"]), 0.0)
    h = jnp.maximum(ln(conv3(h, p["w2"], p["b2"]), p["g2"], p["be2"]), 0.0)
    out = jnp.maximum(jnp.sum(h * p["wl"][0], axis=-1) + p["bl"][0, 0], 0.0)
    return out[None]


def make_params(key, encoder_dim, filter_size):
    k = jax.random.split(key, 6)
    scale1 = 0.1
    return {
        # conv weights stored as [K=3, Cin, Cout]; tap 0 pairs with x[t-1]
        "w1": scale1 * jax.random.normal(k[0], (3, encoder_dim, filter_size), jnp.float32),
        "b1": scale1 * jax.random.normal(k[1], (1, filter_size), jnp.float32),
        "g1": jnp.ones((1, filter_size), jnp.float32),
        "be1": jnp.zeros((1, filter_size), jnp.float32),
        "w2": scale1 * jax.random.normal(k[2], (3, filter_size, filter_size), jnp.float32),
        "b2": scale1 * jax.random.normal(k[3], (1, filter_size), jnp.float32),
        "g2": jnp.ones((1, filter_size), jnp.float32),
        "be2": jnp.zeros((1, filter_size), jnp.float32),
        # linear: [1, filter_size] weight, scalar bias stored as [1, 1]
        "wl": scale1 * jax.random.normal(k[4], (1, filter_size), jnp.float32),
        "bl": scale1 * jax.random.normal(k[5], (1, 1), jnp.float32),
    }


if __name__ == "__main__":
    # model_config: encoder_dim=32, duration_predictor_filter_size=32,
    # duration_predictor_kernel_size=3, dropout=0.1 (identity at eval time).
    # T chosen lane-aligned (128) so time fills the 128-lane axis.
    B, T, ENC_DIM, FILT = 2, 128, 32, 32

    key = jax.random.PRNGKey(0)
    kx, kp = jax.random.split(key)
    x = jax.random.normal(kx, (B, T, ENC_DIM), jnp.float32)
    params = make_params(kp, ENC_DIM, FILT)

    out = jax.block_until_ready(duration_predictor(x, params))
    ref = duration_predictor_ref(x, params)

    assert out.shape == (1, B, T), out.shape
    assert jnp.allclose(out, ref, atol=1e-4, rtol=1e-4), "mismatch vs reference"

    print("KERNEL_OK")
</pallas_src>

<mosaic_0001>
module attributes {stable_mosaic.version = 11 : i64} {
  func.func @duration_predictor_kernel(%arg0: i32, %arg1: memref<2x32x128xf32, #tpu.memory_space<vmem>>, %arg2: memref<3x32x32xf32, #tpu.memory_space<vmem>>, %arg3: memref<3x32x32xf32, #tpu.memory_space<vmem>>, %arg4: memref<32x8xf32, #tpu.memory_space<vmem>>, %arg5: memref<1x1xf32, #tpu.memory_space<smem>>, %arg6: memref<2x1x128xf32, #tpu.memory_space<vmem>>) attributes {dimension_semantics = [#tpu.dimension_semantics<parallel>], iteration_bounds = array<i64: 1>, scalar_prefetch = 0 : i64, scratch_operands = 0 : i64, tpu.core_type = #tpu.core_type<tc>, window_params = [{transform_indices = @transform_0, window_bounds = array<i64: 2, 32, 128>}, {pipeline_mode = #tpu.pipeline_mode<synchronous>, transform_indices = @transform_1, window_bounds = array<i64: 3, 32, 32>}, {pipeline_mode = #tpu.pipeline_mode<synchronous>, transform_indices = @transform_2, window_bounds = array<i64: 3, 32, 32>}, {pipeline_mode = #tpu.pipeline_mode<synchronous>, transform_indices = @transform_3, window_bounds = array<i64: 32, 8>}, {transform_indices = @transform_4, window_bounds = array<i64: 1, 1>}, {transform_indices = @transform_5, window_bounds = array<i64: 2, 1, 128>}]} {
    %c0 = arith.constant 0 : index
    %c0_0 = arith.constant 0 : index
    %0 = vector.load %arg4[%c0, %c0_0] : memref<32x8xf32, #tpu.memory_space<vmem>>, vector<32x8xf32>
    %1 = vector.extract_strided_slice %0 {offsets = [0, 0], sizes = [32, 1], strides = [1, 1]} : vector<32x8xf32> to vector<32x1xf32>
    %2 = vector.extract_strided_slice %0 {offsets = [0, 1], sizes = [32, 1], strides = [1, 1]} : vector<32x8xf32> to vector<32x1xf32>
    %3 = vector.extract_strided_slice %0 {offsets = [0, 2], sizes = [32, 1], strides = [1, 1]} : vector<32x8xf32> to vector<32x1xf32>
    %4 = vector.extract_strided_slice %0 {offsets = [0, 3], sizes = [32, 1], strides = [1, 1]} : vector<32x8xf32> to vector<32x1xf32>
    %5 = vector.extract_strided_slice %0 {offsets = [0, 4], sizes = [32, 1], strides = [1, 1]} : vector<32x8xf32> to vector<32x1xf32>
    %6 = vector.extract_strided_slice %0 {offsets = [0, 5], sizes = [32, 1], strides = [1, 1]} : vector<32x8xf32> to vector<32x1xf32>
    %7 = vector.extract_strided_slice %0 {offsets = [0, 6], sizes = [32, 1], strides = [1, 1]} : vector<32x8xf32> to vector<32x1xf32>
    %c0_1 = arith.constant 0 : index
    %c0_2 = arith.constant 0 : index
    %8 = memref.load %arg5[%c0_1, %c0_2] : memref<1x1xf32, #tpu.memory_space<smem>>
    %c0_3 = arith.constant 0 : index
    %c0_4 = arith.constant 0 : index
    %c0_5 = arith.constant 0 : index
    %9 = vector.load %arg2[%c0_3, %c0_4, %c0_5] : memref<3x32x32xf32, #tpu.memory_space<vmem>>, vector<1x32x32xf32>
    %10 = vector.shape_cast %9 : vector<1x32x32xf32> to vector<32x32xf32>
    %c1 = arith.constant 1 : index
    %c0_6 = arith.constant 0 : index
    %c0_7 = arith.constant 0 : index
    %11 = vector.load %arg2[%c1, %c0_6, %c0_7] : memref<3x32x32xf32, #tpu.memory_space<vmem>>, vector<1x32x32xf32>
    %12 = vector.shape_cast %11 : vector<1x32x32xf32> to vector<32x32xf32>
    %c2 = arith.constant 2 : index
    %c0_8 = arith.constant 0 : index
    %c0_9 = arith.constant 0 : index
    %13 = vector.load %arg2[%c2, %c0_8, %c0_9] : memref<3x32x32xf32, #tpu.memory_space<vmem>>, vector<1x32x32xf32>
    %14 = vector.shape_cast %13 : vector<1x32x32xf32> to vector<32x32xf32>
    %c0_10 = arith.constant 0 : index
    %c0_11 = arith.constant 0 : index
    %c0_12 = arith.constant 0 : index
    %15 = vector.load %arg3[%c0_10, %c0_11, %c0_12] : memref<3x32x32xf32, #tpu.memory_space<vmem>>, vector<1x32x32xf32>
    %16 = vector.shape_cast %15 : vector<1x32x32xf32> to vector<32x32xf32>
    %c1_13 = arith.constant 1 : index
    %c0_14 = arith.constant 0 : index
    %c0_15 = arith.constant 0 : index
    %17 = vector.load %arg3[%c1_13, %c0_14, %c0_15] : memref<3x32x32xf32, #tpu.memory_space<vmem>>, vector<1x32x32xf32>
    %18 = vector.shape_cast %17 : vector<1x32x32xf32> to vector<32x32xf32>
    %c2_16 = arith.constant 2 : index
    %c0_17 = arith.constant 0 : index
    %c0_18 = arith.constant 0 : index
    %19 = vector.load %arg3[%c2_16, %c0_17, %c0_18] : memref<3x32x32xf32, #tpu.memory_space<vmem>>, vector<1x32x32xf32>
    %20 = vector.shape_cast %19 : vector<1x32x32xf32> to vector<32x32xf32>
    %21 = tpu.iota {dimensions = array<i32: 1>} : vector<1x128xi32>
    %c0_i32 = arith.constant 0 : i32
    %22 = vector.broadcast %c0_i32 : i32 to vector<1x128xi32>
    %23 = arith.cmpi eq, %21, %22 : vector<1x128xi32>
    %c127_i32 = arith.constant 127 : i32
    %24 = vector.broadcast %c127_i32 : i32 to vector<1x128xi32>
    %25 = arith.cmpi eq, %21, %24 : vector<1x128xi32>
    %c0_19 = arith.constant 0 : index
    %c0_20 = arith.constant 0 : index
    %c0_21 = arith.constant 0 : index
    %26 = vector.load %arg1[%c0_19, %c0_20, %c0_21] : memref<2x32x128xf32, #tpu.memory_space<vmem>>, vector<1x32x128xf32>
    %27 = vector.shape_cast %26 : vector<1x32x128xf32> to vector<32x128xf32>
    %cst = arith.constant dense<0.000000e+00> : vector<32x128xf32>
    %28 = tpu.matmul %12, %27, %cst {dimension_numbers = #tpu.dot_dimension_numbers<[1], [0], [0], [1], [0, 0, 1, 1], [], []>} : vector<32x32xf32>, vector<32x128xf32>, vector<32x128xf32> -> vector<32x128xf32>
    %c1_i32 = arith.constant 1 : i32
    %29 = tpu.dynamic_rotate %27 by %c1_i32 dim 1 : vector<32x128xf32>, i32 -> vector<32x128xf32>
    %cst_22 = arith.constant 0.000000e+00 : f32
    %30 = vector.shape_cast %23 : vector<1x128xi1> to vector<1x128xi1>
    %31 = vector.broadcast %30 : vector<1x128xi1> to vector<32x128xi1>
    %32 = vector.broadcast %cst_22 : f32 to vector<32x128xf32>
    %33 = arith.select %31, %32, %29 : vector<32x128xi1>, vector<32x128xf32>
    %cst_23 = arith.constant dense<0.000000e+00> : vector<32x128xf32>
    %34 = tpu.matmul %10, %33, %cst_23 {dimension_numbers = #tpu.dot_dimension_numbers<[1], [0], [0], [1], [0, 0, 1, 1], [], []>} : vector<32x32xf32>, vector<32x128xf32>, vector<32x128xf32> -> vector<32x128xf32>
    %35 = arith.addf %28, %34 : vector<32x128xf32>
    %c127_i32_24 = arith.constant 127 : i32
    %36 = tpu.dynamic_rotate %27 by %c127_i32_24 dim 1 : vector<32x128xf32>, i32 -> vector<32x128xf32>
    %cst_25 = arith.constant 0.000000e+00 : f32
    %37 = vector.shape_cast %25 : vector<1x128xi1> to vector<1x128xi1>
    %38 = vector.broadcast %37 : vector<1x128xi1> to vector<32x128xi1>
    %39 = vector.broadcast %cst_25 : f32 to vector<32x128xf32>
    %40 = arith.select %38, %39, %36 : vector<32x128xi1>, vector<32x128xf32>
    %cst_26 = arith.constant dense<0.000000e+00> : vector<32x128xf32>
    %41 = tpu.matmul %14, %40, %cst_26 {dimension_numbers = #tpu.dot_dimension_numbers<[1], [0], [0], [1], [0, 0, 1, 1], [], []>} : vector<32x32xf32>, vector<32x128xf32>, vector<32x128xf32> -> vector<32x128xf32>
    %42 = arith.addf %35, %41 : vector<32x128xf32>
    %43 = vector.broadcast %1 : vector<32x1xf32> to vector<32x128xf32>
    %44 = arith.addf %42, %43 : vector<32x128xf32>
    %cst_27 = arith.constant dense<0.000000e+00> : vector<128xf32>
    %45 = vector.multi_reduction <add>, %44, %cst_27 [0] : vector<32x128xf32> to vector<128xf32>
    %46 = vector.shape_cast %45 : vector<128xf32> to vector<1x128xf32>
    %cst_28 = arith.constant 3.200000e+01 : f32
    %47 = vector.broadcast %cst_28 : f32 to vector<1x128xf32>
    %48 = arith.divf %46, %47 : vector<1x128xf32>
    %49 = vector.broadcast %48 : vector<1x128xf32> to vector<32x128xf32>
    %50 = arith.subf %44, %49 : vector<32x128xf32>
    %51 = arith.mulf %50, %50 : vector<32x128xf32>
    %cst_29 = arith.constant dense<0.000000e+00> : vector<128xf32>
    %52 = vector.multi_reduction <add>, %51, %cst_29 [0] : vector<32x128xf32> to vector<128xf32>
    %53 = vector.shape_cast %52 : vector<128xf32> to vector<1x128xf32>
    %cst_30 = arith.constant 3.200000e+01 : f32
    %54 = vector.broadcast %cst_30 : f32 to vector<1x128xf32>
    %55 = arith.divf %53, %54 : vector<1x128xf32>
    %cst_31 = arith.constant 9.99999974E-6 : f32
    %56 = vector.broadcast %cst_31 : f32 to vector<1x128xf32>
    %57 = arith.addf %55, %56 : vector<1x128xf32>
    %58 = math.rsqrt %57 : vector<1x128xf32>
    %59 = vector.broadcast %58 : vector<1x128xf32> to vector<32x128xf32>
    %60 = arith.mulf %50, %59 : vector<32x128xf32>
    %61 = vector.broadcast %2 : vector<32x1xf32> to vector<32x128xf32>
    %62 = arith.mulf %60, %61 : vector<32x128xf32>
    %63 = vector.broadcast %3 : vector<32x1xf32> to vector<32x128xf32>
    %64 = arith.addf %62, %63 : vector<32x128xf32>
    %cst_32 = arith.constant 0.000000e+00 : f32
    %65 = vector.broadcast %cst_32 : f32 to vector<32x128xf32>
    %66 = arith.maximumf %64, %65 : vector<32x128xf32>
    %cst_33 = arith.constant dense<0.000000e+00> : vector<32x128xf32>
    %67 = tpu.matmul %18, %66, %cst_33 {dimension_numbers = #tpu.dot_dimension_numbers<[1], [0], [0], [1], [0, 0, 1, 1], [], []>} : vector<32x32xf32>, vector<32x128xf32>, vector<32x128xf32> -> vector<32x128xf32>
    %c1_i32_34 = arith.constant 1 : i32
    %68 = tpu.dynamic_rotate %66 by %c1_i32_34 dim 1 : vector<32x128xf32>, i32 -> vector<32x128xf32>
    %cst_35 = arith.constant 0.000000e+00 : f32
    %69 = vector.shape_cast %23 : vector<1x128xi1> to vector<1x128xi1>
    %70 = vector.broadcast %69 : vector<1x128xi1> to vector<32x128xi1>
    %71 = vector.broadcast %cst_35 : f32 to vector<32x128xf32>
    %72 = arith.select %70, %71, %68 : vector<32x128xi1>, vector<32x128xf32>
    %cst_36 = arith.constant dense<0.000000e+00> : vector<32x128xf32>
    %73 = tpu.matmul %16, %72, %cst_36 {dimension_numbers = #tpu.dot_dimension_numbers<[1], [0], [0], [1], [0, 0, 1, 1], [], []>} : vector<32x32xf32>, vector<32x128xf32>, vector<32x128xf32> -> vector<32x128xf32>
    %74 = arith.addf %67, %73 : vector<32x128xf32>
    %c127_i32_37 = arith.constant 127 : i32
    %75 = tpu.dynamic_rotate %66 by %c127_i32_37 dim 1 : vector<32x128xf32>, i32 -> vector<32x128xf32>
    %cst_38 = arith.constant 0.000000e+00 : f32
    %76 = vector.shape_cast %25 : vector<1x128xi1> to vector<1x128xi1>
    %77 = vector.broadcast %76 : vector<1x128xi1> to vector<32x128xi1>
    %78 = vector.broadcast %cst_38 : f32 to vector<32x128xf32>
    %79 = arith.select %77, %78, %75 : vector<32x128xi1>, vector<32x128xf32>
    %cst_39 = arith.constant dense<0.000000e+00> : vector<32x128xf32>
    %80 = tpu.matmul %20, %79, %cst_39 {dimension_numbers = #tpu.dot_dimension_numbers<[1], [0], [0], [1], [0, 0, 1, 1], [], []>} : vector<32x32xf32>, vector<32x128xf32>, vector<32x128xf32> -> vector<32x128xf32>
    %81 = arith.addf %74, %80 : vector<32x128xf32>
    %82 = vector.broadcast %4 : vector<32x1xf32> to vector<32x128xf32>
    %83 = arith.addf %81, %82 : vector<32x128xf32>
    %cst_40 = arith.constant dense<0.000000e+00> : vector<128xf32>
    %84 = vector.multi_reduction <add>, %83, %cst_40 [0] : vector<32x128xf32> to vector<128xf32>
    %85 = vector.shape_cast %84 : vector<128xf32> to vector<1x128xf32>
    %cst_41 = arith.constant 3.200000e+01 : f32
    %86 = vector.broadcast %cst_41 : f32 to vector<1x128xf32>
    %87 = arith.divf %85, %86 : vector<1x128xf32>
    %88 = vector.broadcast %87 : vector<1x128xf32> to vector<32x128xf32>
    %89 = arith.subf %83, %88 : vector<32x128xf32>
    %90 = arith.mulf %89, %89 : vector<32x128xf32>
    %cst_42 = arith.constant dense<0.000000e+00> : vector<128xf32>
    %91 = vector.multi_reduction <add>, %90, %cst_42 [0] : vector<32x128xf32> to vector<128xf32>
    %92 = vector.shape_cast %91 : vector<128xf32> to vector<1x128xf32>
    %cst_43 = arith.constant 3.200000e+01 : f32
    %93 = vector.broadcast %cst_43 : f32 to vector<1x128xf32>
    %94 = arith.divf %92, %93 : vector<1x128xf32>
    %cst_44 = arith.constant 9.99999974E-6 : f32
    %95 = vector.broadcast %cst_44 : f32 to vector<1x128xf32>
    %96 = arith.addf %94, %95 : vector<1x128xf32>
    %97 = math.rsqrt %96 : vector<1x128xf32>
    %98 = vector.broadcast %97 : vector<1x128xf32> to vector<32x128xf32>
    %99 = arith.mulf %89, %98 : vector<32x128xf32>
    %100 = vector.broadcast %5 : vector<32x1xf32> to vector<32x128xf32>
    %101 = arith.mulf %99, %100 : vector<32x128xf32>
    %102 = vector.broadcast %6 : vector<32x1xf32> to vector<32x128xf32>
    %103 = arith.addf %101, %102 : vector<32x128xf32>
    %cst_45 = arith.constant 0.000000e+00 : f32
    %104 = vector.broadcast %cst_45 : f32 to vector<32x128xf32>
    %105 = arith.maximumf %103, %104 : vector<32x128xf32>
    %106 = vector.broadcast %7 : vector<32x1xf32> to vector<32x128xf32>
    %107 = arith.mulf %105, %106 : vector<32x128xf32>
    %cst_46 = arith.constant dense<0.000000e+00> : vector<128xf32>
    %108 = vector.multi_reduction <add>, %107, %cst_46 [0] : vector<32x128xf32> to vector<128xf32>
    %109 = vector.shape_cast %108 : vector<128xf32> to vector<1x128xf32>
    %110 = vector.broadcast %8 : f32 to vector<1x128xf32>
    %111 = arith.addf %109, %110 : vector<1x128xf32>
    %cst_47 = arith.constant 0.000000e+00 : f32
    %112 = vector.broadcast %cst_47 : f32 to vector<1x128xf32>
    %113 = arith.maximumf %111, %112 : vector<1x128xf32>
    %c0_48 = arith.constant 0 : index
    %c0_49 = arith.constant 0 : index
    %c0_50 = arith.constant 0 : index
    %114 = vector.load %arg6[%c0_48, %c0_49, %c0_50] : memref<2x1x128xf32, #tpu.memory_space<vmem>>, vector<1x1x128xf32>
    %115 = vector.shape_cast %114 : vector<1x1x128xf32> to vector<1x128xf32>
    %116 = vector.shape_cast %113 : vector<1x128xf32> to vector<1x1x128xf32>
    tpu.vector_store %arg6[%c0_48, %c0_49, %c0_50], %116 {strides = array<i32>} : memref<2x1x128xf32, #tpu.memory_space<vmem>>, vector<1x1x128xf32>,
    %c1_51 = arith.constant 1 : index
    %c0_52 = arith.constant 0 : index
    %c0_53 = arith.constant 0 : index
    %117 = vector.load %arg1[%c1_51, %c0_52, %c0_53] : memref<2x32x128xf32, #tpu.memory_space<vmem>>, vector<1x32x128xf32>
    %118 = vector.shape_cast %117 : vector<1x32x128xf32> to vector<32x128xf32>
    %cst_54 = arith.constant dense<0.000000e+00> : vector<32x128xf32>
    %119 = tpu.matmul %12, %118, %cst_54 {dimension_numbers = #tpu.dot_dimension_numbers<[1], [0], [0], [1], [0, 0, 1, 1], [], []>} : vector<32x32xf32>, vector<32x128xf32>, vector<32x128xf32> -> vector<32x128xf32>
    %c1_i32_55 = arith.constant 1 : i32
    %120 = tpu.dynamic_rotate %118 by %c1_i32_55 dim 1 : vector<32x128xf32>, i32 -> vector<32x128xf32>
    %cst_56 = arith.constant 0.000000e+00 : f32
    %121 = vector.shape_cast %23 : vector<1x128xi1> to vector<1x128xi1>
    %122 = vector.broadcast %121 : vector<1x128xi1> to vector<32x128xi1>
    %123 = vector.broadcast %cst_56 : f32 to vector<32x128xf32>
    %124 = arith.select %122, %123, %120 : vector<32x128xi1>, vector<32x128xf32>
    %cst_57 = arith.constant dense<0.000000e+00> : vector<32x128xf32>
    %125 = tpu.matmul %10, %124, %cst_57 {dimension_numbers = #tpu.dot_dimension_numbers<[1], [0], [0], [1], [0, 0, 1, 1], [], []>} : vector<32x32xf32>, vector<32x128xf32>, vector<32x128xf32> -> vector<32x128xf32>
    %126 = arith.addf %119, %125 : vector<32x128xf32>
    %c127_i32_58 = arith.constant 127 : i32
    %127 = tpu.dynamic_rotate %118 by %c127_i32_58 dim 1 : vector<32x128xf32>, i32 -> vector<32x128xf32>
    %cst_59 = arith.constant 0.000000e+00 : f32
    %128 = vector.shape_cast %25 : vector<1x128xi1> to vector<1x128xi1>
    %129 = vector.broadcast %128 : vector<1x128xi1> to vector<32x128xi1>
    %130 = vector.broadcast %cst_59 : f32 to vector<32x128xf32>
    %131 = arith.select %129, %130, %127 : vector<32x128xi1>, vector<32x128xf32>
    %cst_60 = arith.constant dense<0.000000e+00> : vector<32x128xf32>
    %132 = tpu.matmul %14, %131, %cst_60 {dimension_numbers = #tpu.dot_dimension_numbers<[1], [0], [0], [1], [0, 0, 1, 1], [], []>} : vector<32x32xf32>, vector<32x128xf32>, vector<32x128xf32> -> vector<32x128xf32>
    %133 = arith.addf %126, %132 : vector<32x128xf32>
    %134 = vector.broadcast %1 : vector<32x1xf32> to vector<32x128xf32>
    %135 = arith.addf %133, %134 : vector<32x128xf32>
    %cst_61 = arith.constant dense<0.000000e+00> : vector<128xf32>
    %136 = vector.multi_reduction <add>, %135, %cst_61 [0] : vector<32x128xf32> to vector<128xf32>
    %137 = vector.shape_cast %136 : vector<128xf32> to vector<1x128xf32>
    %cst_62 = arith.constant 3.200000e+01 : f32
    %138 = vector.broadcast %cst_62 : f32 to vector<1x128xf32>
    %139 = arith.divf %137, %138 : vector<1x128xf32>
    %140 = vector.broadcast %139 : vector<1x128xf32> to vector<32x128xf32>
    %141 = arith.subf %135, %140 : vector<32x128xf32>
    %142 = arith.mulf %141, %141 : vector<32x128xf32>
    %cst_63 = arith.constant dense<0.000000e+00> : vector<128xf32>
    %143 = vector.multi_reduction <add>, %142, %cst_63 [0] : vector<32x128xf32> to vector<128xf32>
    %144 = vector.shape_cast %143 : vector<128xf32> to vector<1x128xf32>
    %cst_64 = arith.constant 3.200000e+01 : f32
    %145 = vector.broadcast %cst_64 : f32 to vector<1x128xf32>
    %146 = arith.divf %144, %145 : vector<1x128xf32>
    %cst_65 = arith.constant 9.99999974E-6 : f32
    %147 = vector.broadcast %cst_65 : f32 to vector<1x128xf32>
    %148 = arith.addf %146, %147 : vector<1x128xf32>
    %149 = math.rsqrt %148 : vector<1x128xf32>
    %150 = vector.broadcast %149 : vector<1x128xf32> to vector<32x128xf32>
    %151 = arith.mulf %141, %150 : vector<32x128xf32>
    %152 = vector.broadcast %2 : vector<32x1xf32> to vector<32x128xf32>
    %153 = arith.mulf %151, %152 : vector<32x128xf32>
    %154 = vector.broadcast %3 : vector<32x1xf32> to vector<32x128xf32>
    %155 = arith.addf %153, %154 : vector<32x128xf32>
    %cst_66 = arith.constant 0.000000e+00 : f32
    %156 = vector.broadcast %cst_66 : f32 to vector<32x128xf32>
    %157 = arith.maximumf %155, %156 : vector<32x128xf32>
    %cst_67 = arith.constant dense<0.000000e+00> : vector<32x128xf32>
    %158 = tpu.matmul %18, %157, %cst_67 {dimension_numbers = #tpu.dot_dimension_numbers<[1], [0], [0], [1], [0, 0, 1, 1], [], []>} : vector<32x32xf32>, vector<32x128xf32>, vector<32x128xf32> -> vector<32x128xf32>
    %c1_i32_68 = arith.constant 1 : i32
    %159 = tpu.dynamic_rotate %157 by %c1_i32_68 dim 1 : vector<32x128xf32>, i32 -> vector<32x128xf32>
    %cst_69 = arith.constant 0.000000e+00 : f32
    %160 = vector.shape_cast %23 : vector<1x128xi1> to vector<1x128xi1>
    %161 = vector.broadcast %160 : vector<1x128xi1> to vector<32x128xi1>
    %162 = vector.broadcast %cst_69 : f32 to vector<32x128xf32>
    %163 = arith.select %161, %162, %159 : vector<32x128xi1>, vector<32x128xf32>
    %cst_70 = arith.constant dense<0.000000e+00> : vector<32x128xf32>
    %164 = tpu.matmul %16, %163, %cst_70 {dimension_numbers = #tpu.dot_dimension_numbers<[1], [0], [0], [1], [0, 0, 1, 1], [], []>} : vector<32x32xf32>, vector<32x128xf32>, vector<32x128xf32> -> vector<32x128xf32>
    %165 = arith.addf %158, %164 : vector<32x128xf32>
    %c127_i32_71 = arith.constant 127 : i32
    %166 = tpu.dynamic_rotate %157 by %c127_i32_71 dim 1 : vector<32x128xf32>, i32 -> vector<32x128xf32>
    %cst_72 = arith.constant 0.000000e+00 : f32
    %167 = vector.shape_cast %25 : vector<1x128xi1> to vector<1x128xi1>
    %168 = vector.broadcast %167 : vector<1x128xi1> to vector<32x128xi1>
    %169 = vector.broadcast %cst_72 : f32 to vector<32x128xf32>
    %170 = arith.select %168, %169, %166 : vector<32x128xi1>, vector<32x128xf32>
    %cst_73 = arith.constant dense<0.000000e+00> : vector<32x128xf32>
    %171 = tpu.matmul %20, %170, %cst_73 {dimension_numbers = #tpu.dot_dimension_numbers<[1], [0], [0], [1], [0, 0, 1, 1], [], []>} : vector<32x32xf32>, vector<32x128xf32>, vector<32x128xf32> -> vector<32x128xf32>
    %172 = arith.addf %165, %171 : vector<32x128xf32>
    %173 = vector.broadcast %4 : vector<32x1xf32> to vector<32x128xf32>
    %174 = arith.addf %172, %173 : vector<32x128xf32>
    %cst_74 = arith.constant dense<0.000000e+00> : vector<128xf32>
    %175 = vector.multi_reduction <add>, %174, %cst_74 [0] : vector<32x128xf32> to vector<128xf32>
    %176 = vector.shape_cast %175 : vector<128xf32> to vector<1x128xf32>
    %cst_75 = arith.constant 3.200000e+01 : f32
    %177 = vector.broadcast %cst_75 : f32 to vector<1x128xf32>
    %178 = arith.divf %176, %177 : vector<1x128xf32>
    %179 = vector.broadcast %178 : vector<1x128xf32> to vector<32x128xf32>
    %180 = arith.subf %174, %179 : vector<32x128xf32>
    %181 = arith.mulf %180, %180 : vector<32x128xf32>
    %cst_76 = arith.constant dense<0.000000e+00> : vector<128xf32>
    %182 = vector.multi_reduction <add>, %181, %cst_76 [0] : vector<32x128xf32> to vector<128xf32>
    %183 = vector.shape_cast %182 : vector<128xf32> to vector<1x128xf32>
    %cst_77 = arith.constant 3.200000e+01 : f32
    %184 = vector.broadcast %cst_77 : f32 to vector<1x128xf32>
    %185 = arith.divf %183, %184 : vector<1x128xf32>
    %cst_78 = arith.constant 9.99999974E-6 : f32
    %186 = vector.broadcast %cst_78 : f32 to vector<1x128xf32>
    %187 = arith.addf %185, %186 : vector<1x128xf32>
    %188 = math.rsqrt %187 : vector<1x128xf32>
    %189 = vector.broadcast %188 : vector<1x128xf32> to vector<32x128xf32>
    %190 = arith.mulf %180, %189 : vector<32x128xf32>
    %191 = vector.broadcast %5 : vector<32x1xf32> to vector<32x128xf32>
    %192 = arith.mulf %190, %191 : vector<32x128xf32>
    %193 = vector.broadcast %6 : vector<32x1xf32> to vector<32x128xf32>
    %194 = arith.addf %192, %193 : vector<32x128xf32>
    %cst_79 = arith.constant 0.000000e+00 : f32
    %195 = vector.broadcast %cst_79 : f32 to vector<32x128xf32>
    %196 = arith.maximumf %194, %195 : vector<32x128xf32>
    %197 = vector.broadcast %7 : vector<32x1xf32> to vector<32x128xf32>
    %198 = arith.mulf %196, %197 : vector<32x128xf32>
    %cst_80 = arith.constant dense<0.000000e+00> : vector<128xf32>
    %199 = vector.multi_reduction <add>, %198, %cst_80 [0] : vector<32x128xf32> to vector<128xf32>
    %200 = vector.shape_cast %199 : vector<128xf32> to vector<1x128xf32>
    %201 = vector.broadcast %8 : f32 to vector<1x128xf32>
    %202 = arith.addf %200, %201 : vector<1x128xf32>
    %cst_81 = arith.constant 0.000000e+00 : f32
    %203 = vector.broadcast %cst_81 : f32 to vector<1x128xf32>
    %204 = arith.maximumf %202, %203 : vector<1x128xf32>
    %c1_82 = arith.constant 1 : index
    %c0_83 = arith.constant 0 : index
    %c0_84 = arith.constant 0 : index
    %205 = vector.load %arg6[%c1_82, %c0_83, %c0_84] : memref<2x1x128xf32, #tpu.memory_space<vmem>>, vector<1x1x128xf32>
    %206 = vector.shape_cast %205 : vector<1x1x128xf32> to vector<1x128xf32>
    %207 = vector.shape_cast %204 : vector<1x128xf32> to vector<1x1x128xf32>
    tpu.vector_store %arg6[%c1_82, %c0_83, %c0_84], %207 {strides = array<i32>} : memref<2x1x128xf32, #tpu.memory_space<vmem>>, vector<1x1x128xf32>,
    return
  }
  func.func @transform_0(%arg0: i32) -> (i32, i32, i32) {
    %c0_i32 = arith.constant 0 : i32
    %c0_i32_0 = arith.constant 0 : i32
    %c0_i32_1 = arith.constant 0 : i32
    return %arg0, %c0_i32, %c0_i32_0 : i32, i32, i32
  }
  func.func @transform_1(%arg0: i32) -> (i32, i32, i32) {
    %c0_i32 = arith.constant 0 : i32
    %c0_i32_0 = arith.constant 0 : i32
    %c0_i32_1 = arith.constant 0 : i32
    %c0_i32_2 = arith.constant 0 : i32
    return %c0_i32, %c0_i32_0, %c0_i32_1 : i32, i32, i32
  }
  func.func @transform_2(%arg0: i32) -> (i32, i32, i32) {
    %c0_i32 = arith.constant 0 : i32
    %c0_i32_0 = arith.constant 0 : i32
    %c0_i32_1 = arith.constant 0 : i32
    %c0_i32_2 = arith.constant 0 : i32
    return %c0_i32, %c0_i32_0, %c0_i32_1 : i32, i32, i32
  }
  func.func @transform_3(%arg0: i32) -> (i32, i32) {
    %c0_i32 = arith.constant 0 : i32
    %c0_i32_0 = arith.constant 0 : i32
    %c0_i32_1 = arith.constant 0 : i32
    return %c0_i32, %c0_i32_0 : i32, i32
  }
  func.func @transform_4(%arg0: i32) -> (i32, i32) {
    %c0_i32 = arith.constant 0 : i32
    %c0_i32_0 = arith.constant 0 : i32
    %c0_i32_1 = arith.constant 0 : i32
    return %c0_i32, %c0_i32_0 : i32, i32
  }
  func.func @transform_5(%arg0: i32) -> (i32, i32, i32) {
    %c0_i32 = arith.constant 0 : i32
    %c0_i32_0 = arith.constant 0 : i32
    %c0_i32_1 = arith.constant 0 : i32
    return %arg0, %c0_i32, %c0_i32_0 : i32, i32, i32
  }
}

</mosaic_0001>

<bundles_post_ra>
// kernel: tpu_custom_call.1
= control target key start
LH: loop header
LB: loop body
LE: loop exit
PB: predicated region body
PF: predicated region fallthrough
CT: control target
= control target key end

     0   :  { %11 = vsyncpa [#allocation4], 0  ;;  %s2767_s0 = inlined_call_operand.hbm [shape: f32[2,32,128], index: 0, kind: input, shape index: {}]   ;;  %s2768_s1 = inlined_call_operand.hbm [shape: f32[3,32,32], index: 1, kind: input, shape index: {}]   ;;  %s2769_s2 = inlined_call_operand.hbm [shape: f32[3,32,32], index: 2, kind: input, shape index: {}]   ;;  %s2770_s3 = inlined_call_operand.vmem [shape: f32[32,8], index: 3, kind: input, shape index: {}]   ;;  %s2771_s4 = inlined_call_operand.<no memory space> [shape: f32[1,1], index: 4, kind: input, shape index: {}]   ;;  %s2772_s5 = inlined_call_operand.hbm [shape: f32[2,1,128], index: 5, kind: output, shape index: {}]  }
   0x1   :  { %12 = vsyncpa [#allocation7], 0 }
   0x2   :  { %13 = vsyncpa [#allocation5], 0  ;;  %s2193_s18 = smov [#allocation6]   ;;  %s2194_s20 = smov [#allocation3]  }
   0x3   :  { %s31_s19 = sshll.u32 %s2193_s18, 4  ;;  %s19_s21 = sshll.u32 %s2194_s20, 4  ;;  %s32_s19 = int_to_ptr.vmem [resolvable:$true] %s31_s19  ;;  %s20_s21 = int_to_ptr.vmem [resolvable:$true] %s19_s21 }
   0x4   :  { %s2115_s22 = scalar_lea.vmem %s32_s19, 1536  ;;  %p2120_p1 = scmp.lt.s32.totalorder %s32_s19, %s32_s19 }
   0x5   :  { %p2116_p0 = scmp.ne.s32.totalorder %s32_s19, %s2115_s22  ;;  %p2121_p2 = scmp.lt.s32.totalorder %s2115_s22, %s2115_s22 }
   0x7   :  { %p2122_p3 = por %p2121_p2, %p2120_p1 }
   0x9   :  { %p2123_p4 = pnand %p2122_p3, %p2116_p0 }
   0xb   :  { %2126 = shalt.err (!%p2123_p4)
}
   0xc   :  { %s2195_s23 = smov 128   ;;  %s2196_s24 = smov 8  }
   0xd   :  { %37 = dma.hbm_to_vmem [thread:$0]  %s2768_s1, 1536, %s32_s19, [#allocation7], %s2195_s23, %s2195_s23, %s2196_s24  }
   0xe   :  { %s2135_s27 = scalar_lea.vmem %s20_s21, 1024  ;;  %p2140_p6 = scmp.lt.s32.totalorder %s20_s21, %s20_s21 }
   0xf   :  { %p2136_p5 = scmp.ne.s32.totalorder %s20_s21, %s2135_s27  ;;  %p2141_p7 = scmp.lt.s32.totalorder %s2135_s27, %s2135_s27 }
  0x11   :  { %p2142_p8 = por %p2141_p7, %p2140_p6 }
  0x13   :  { %p2143_p9 = pnand %p2142_p8, %p2136_p5 }
  0x15   :  { %2146 = shalt.err (!%p2143_p9)
}
  0x16   :  { %25 = dma.hbm_to_vmem [thread:$0]  %s2767_s0, 1024, %s20_s21, [#allocation4], %s2195_s23, %s2195_s23, %s2196_s24  }
  0x17   :  { %s2197_s30 = smov [#allocation8]  }
  0x18   :  { %s43_s6 = sshll.u32 %s2197_s30, 4  ;;  %s44_s6 = int_to_ptr.vmem [resolvable:$true] %s43_s6 }
  0x19   :  { %s2155_s7 = scalar_lea.vmem %s44_s6, 1536  ;;  %p2160_p11 = scmp.lt.s32.totalorder %s44_s6, %s44_s6 }
  0x1a   :  { %p2156_p10 = scmp.ne.s32.totalorder %s44_s6, %s2155_s7  ;;  %p2161_p12 = scmp.lt.s32.totalorder %s2155_s7, %s2155_s7 }
  0x1c   :  { %p2162_p13 = por %p2161_p12, %p2160_p11 }
  0x1e   :  { %p2163_p0 = pnand %p2162_p13, %p2156_p10 }
  0x20   :  { %2166 = shalt.err (!%p2163_p0)
}
  0x21   :  { %49 = dma.hbm_to_vmem [thread:$0]  %s2769_s2, 1536, %s44_s6, [#allocation7], %s2195_s23, %s2195_s23, %s2196_s24  }
  0x22   :  { %2187 = dma.done.wait [#allocation4], 1024  }
  0x23   :  { %2188 = vsyncadd [#allocation4], 4294966272 }
  0x24   :  { %2189 = dma.done.wait [#allocation7], 3072  }
  0x25   :  { %2190 = vsyncadd [#allocation7], 4294964224  ;;  %vm118_vm0 = vcmask 261120   ;;  %v103_v0 = vld [vmem:[#allocation3 + $0x18] sm:$0xff]  ;;  %v101_v1 = vld [vmem:[#allocation3 + $0x8] sm:$0xff]  ;;  %s2198_s0 = smov 1   ;;  %v96_v16 = vlaneseq }
  0x26   :  { %110 = vrot.lane.b32.xlu0 %v103_v0, %s2198_s0  ;;  %106 = vrot.lane.b32.xlu1 %v101_v1, %s2198_s0  ;;  %v2250_v2 = vld [vmem:[#allocation6] sm:$0xff]  ;;  %v102_v4 = vld [vmem:[#allocation3 + $0x10] sm:$0xff]  ;;  %s2199_s2 = smov 127   ;;  %v2262_v6 = vld [vmem:[#allocation6 + $0x28] sm:$0xff]  ;;  %v2200_v8 = vmov 0   ;;  %v2201_v14 = vmov 1  }
  0x27   :  { %v2252_v3 = vld [vmem:[#allocation6 + $0x20] sm:$0xff]  ;;  %1911 = vmatprep.subr.mxu1 %v103_v0  ;;  %1905 = vmatprep.mubr.msk.f32.mxu0 %vm118_vm0, %v2250_v2  ;;  %v2264_v7 = vld [vmem:[#allocation6 + $0x30] sm:$0xff]  ;;  %v2270_v9 = vld [vmem:[#allocation6 + $0x38] sm:$0xff]  ;;  %v2202_v15 = vmov 2   ;;  %v2308_v17 = vand.u32 127, %v96_v16  ;;  %s2207_s20 = smov [#allocation9]  }
  0x28   :  { %v100_v5 = vld [vmem:[#allocation3] sm:$0xff]  ;;  %1912 = vmatpush3.msra.mxu1 %v103_v0  ;;  %1919 = vmatprep.mubr.msk.f32.mxu1 %vm118_vm0, %v2252_v3  ;;  %v2277_v10 = vld [vmem:[%s2770_s3 + $0x8] sm:$0xff]  ;;  %v2291_v12 = vld [vmem:[%s2770_s3 + $0x10] sm:$0xff]  ;;  %s1674_s21 = sshll.u32 %s2207_s20, 4  ;;  %s1675_s21 = int_to_ptr.vmem [resolvable:$true] %s1674_s21 }
  0x29   :  { %1913 = vmatprep.subr.mxu1 %v102_v4  ;;  %2082 = vset.pattern.permute.xlu1 %v2200_v8  ;;  %v2282_v11 = vld [vmem:[%s2770_s3] sm:$0xff]  ;;  %v2296_v13 = vld [vmem:[%s2770_s3 + $0x18] sm:$0xff]  ;;  %vm1799_vm1 = vcmp.ne.s32.totalorder %v2308_v17, 0  ;;  %v2323_v23 = vld [vmem:[#allocation6 + $0x8] sm:$0xff]  ;;  %vm1800_vm2 = vcmp.ne.s32.totalorder %v2308_v17, 127  ;;  %s2167_s24 = scalar_lea.vmem %s1675_s21, 32  ;;  %p2172_p2 = scmp.lt.s32.totalorder %s1675_s21, %s1675_s21 }
  0x2a   :  { %108 = vrot.lane.b32.xlu0 %v102_v4, %s2198_s0  ;;  %104 = vrot.lane.b32.xlu1 %v100_v5, %s2198_s0  ;;  %v2328_v25 = vld [vmem:[#allocation6 + $0x10] sm:$0xff]  ;;  %v2340_v27 = vld [vmem:[#allocation6 + $0x18] sm:$0xff]  ;;  %v2344_v28 = vld [vmem:[#allocation6 + $0x40] sm:$0xff]  ;;  %p2168_p1 = scmp.ne.s32.totalorder %s1675_s21, %s2167_s24  ;;  %p2173_p3 = scmp.lt.s32.totalorder %s2167_s24, %s2167_s24 }
  0x2b   :  { %1914 = vmatpush3.msra.mxu1 %v102_v4  ;;  %2081 = vset.pattern.permute.xlu0 %v2200_v8  ;;  %v2356_v30 = vld [vmem:[#allocation6 + $0x48] sm:$0xff]  ;;  %v2360_v31 = vld [vmem:[#allocation6 + $0x50] sm:$0xff]  ;;  %v2368_v32 = vld [vmem:[#allocation6 + $0x58] sm:$0xff] }
  0x2c   :  { %1915 = vmatprep.subr.mxu1 %v101_v1  ;;  %v2372_v33 = vld [vmem:[#allocation3 + $0x38] sm:$0xff]  ;;  %v2376_v34 = vld [vmem:[#allocation8 + $0x20] sm:$0xff]  ;;  %p2174_p4 = por %p2173_p3, %p2172_p2 }
  0x2d   :  { %1916 = vmatpush3.msra.mxu1 %v101_v1 }
  0x2e   :  { %319 = vrot.lane.b32.xlu0 %v103_v0, %s2199_s2  ;;  %317 = vrot.lane.b32.xlu1 %v102_v4, %s2199_s2  ;;  %p2175_p5 = pnand %p2174_p4, %p2168_p1 }
  0x2f   :  { %1917 = vmatprep.subr.mxu1 %v100_v5 }
  0x30   :  { %1918 = vmatpush3.msra.mxu1 %v100_v5 }
  0x31   :  { %1920 = vmatmul.mubr.msk.f32.vlgmr.msra.gmra.mxu1 %vm118_vm0, %v2262_v6 }
  0x32   :  { %315 = vrot.lane.b32.xlu0 %v101_v1, %s2199_s2  ;;  %313 = vrot.lane.b32.xlu1 %v100_v5, %s2199_s2 }
  0x33   :  { %1922 = vmatprep.mubr.msk.f32.mxu1 %vm118_vm0, %v2264_v7 }
  0x35   :  { %1923 = vmatmul.mubr.msk.f32.gmra.mxu1 %vm118_vm0, %v2270_v9 }
  0x36   :  { %435 = vperm.xlu1 %2082, %v2277_v10   ;;  %430 = vperm.xlu0 %2081, %v2282_v11  }
  0x3a   :  { %440 = vperm.xlu1 %2082, %v2291_v12   ;;  %445 = vperm.xlu0 %2081, %v2296_v13  }
  0x3e   :  { %2083 = vset.pattern.permute.xlu1 %v2201_v14  ;;  %2084 = vset.pattern.permute.xlu0 %v2201_v14 }
  0x3f   :  { %500 = vperm.xlu1 %2083, %v2296_v13   ;;  %496 = vperm.xlu0 %2084, %v2291_v12  }
  0x43   :  { %2085 = vset.pattern.permute.xlu1 %v2202_v15  ;;  %2087 = vset.pattern.permute.xlu0 %v2202_v15 }
  0x44   :  { %520 = vperm.xlu1 %2085, %v2296_v13   ;;  %516 = vperm.xlu0 %2087, %v2291_v12  }
  0x48   :  { %2086 = vset.pattern.permute.xlu1 %v2201_v14  ;;  %508 = vperm.xlu0 %2087, %v2282_v11  }
  0x49   :  { %492 = vperm.xlu1 %2086, %v2277_v10  }
  0x4d   :  { %488 = vperm.xlu1 %2086, %v2282_v11  }
  0x51   :  { %2088 = vset.pattern.permute.xlu1 %v2202_v15 }
  0x52   :  { %512 = vperm.xlu1 %2088, %v2277_v10  }
  0x56   :  { %992 = vrot.lane.b32.xlu1 %v2372_v33, %s2198_s0 }
  0x98   :  { %v111_v18 = vpop.permute.xlu0 %110  ;;  %v107_v19 = vpop.permute.xlu1 %106 }
  0x99   :  { %1897 = vmatprep.subr.msk.mxu0 %vm1799_vm1, %v111_v18 }
  0x9a   :  { %1898 = vmatpush3.msk.msra.mxu0 %vm1799_vm1, %v111_v18 }
  0x9c   :  { %v109_v20 = vpop.permute.xlu0 %108  ;;  %v105_v21 = vpop.permute.xlu1 %104 }
  0x9d   :  { %1899 = vmatprep.subr.msk.mxu0 %vm1799_vm1, %v109_v20 }
  0x9e   :  { %1900 = vmatpush3.msk.msra.mxu0 %vm1799_vm1, %v109_v20 }
  0x9f   :  { %1901 = vmatprep.subr.msk.mxu0 %vm1799_vm1, %v107_v19 }
  0xa0   :  { %1902 = vmatpush3.msk.msra.mxu0 %vm1799_vm1, %v107_v19  ;;  %v320_v22 = vpop.permute.xlu0 %319  ;;  %v318_v24 = vpop.permute.xlu1 %317 }
  0xa1   :  { %1903 = vmatprep.subr.msk.mxu0 %vm1799_vm1, %v105_v21 }
  0xa2   :  { %1904 = vmatpush3.msk.msra.mxu0 %vm1799_vm1, %v105_v21 }
  0xa3   :  { %1906 = vmatmul.mubr.msk.f32.vlgmr.msra.gmra.mxu0 %vm118_vm0, %v2323_v23  ;;  %1925 = vmatprep.subr.msk.mxu0 %vm1800_vm2, %v320_v22 }
  0xa4   :  { %1926 = vmatpush3.msk.msra.mxu0 %vm1800_vm2, %v320_v22  ;;  %v316_v26 = vpop.permute.xlu0 %315  ;;  %1908 = vmatprep.mubr.msk.f32.mxu0 %vm118_vm0, %v2328_v25  ;;  %v314_v29 = vpop.permute.xlu1 %313 }
  0xa5   :  { %1927 = vmatprep.subr.msk.mxu0 %vm1800_vm2, %v318_v24 }
  0xa6   :  { %1928 = vmatpush3.msk.msra.mxu0 %vm1800_vm2, %v318_v24 }
  0xa7   :  { %1909 = vmatmul.mubr.msk.f32.gmra.mxu0 %vm118_vm0, %v2340_v27  ;;  %1929 = vmatprep.subr.msk.mxu0 %vm1800_vm2, %v316_v26 }
  0xa8   :  { %1930 = vmatpush3.msk.msra.mxu0 %vm1800_vm2, %v316_v26  ;;  %1933 = vmatprep.mubr.msk.f32.mxu0 %vm118_vm0, %v2344_v28 }
  0xa9   :  { %1931 = vmatprep.subr.msk.mxu0 %vm1800_vm2, %v314_v29 }
  0xaa   :  { %1932 = vmatpush3.msk.msra.mxu0 %vm1800_vm2, %v314_v29 }
  0xab   :  { %1934 = vmatmul.mubr.msk.f32.vlgmr.msra.gmra.mxu0 %vm118_vm0, %v2356_v30 }
  0xac   :  { %1936 = vmatprep.mubr.msk.f32.mxu0 %vm118_vm0, %v2360_v31 }
  0xaf   :  { %1937 = vmatmul.mubr.msk.f32.gmra.mxu0 %vm118_vm0, %v2368_v32 }
  0xb0   :  { %1961 = vmatprep.mubr.msk.f32.mxu0 %vm118_vm0, %v2376_v34 }
  0xb1   :  { %v2380_v45 = vpop.permute.xlu1 %435  ;;  %v2382_v46 = vpop.permute.xlu0 %430 }
  0xb5   :  { %v2386_v59 = vpop.permute.xlu1 %440  ;;  %v2388_v60 = vpop.permute.xlu0 %445 }
  0xf1   :  { %v1921_v35 = vpop.f32.mrf.mxu1 }
  0xf3   :  { %v294_v38 = vpop.f32.mrf.mxu1 }
  0xf5   :  { %v1924_v40 = vpop.f32.mrf.mxu1 }
  0xf7   :  { %v304_v47 = vpop.f32.mrf.mxu1 }
 0x163   :  { %v1907_v36 = vpop.f32.mrf.mxu0 }
 0x164   :  { %v300_v43 = vadd.f32 %v1921_v35, %v1907_v36 }
 0x165   :  { %v197_v37 = vpop.f32.mrf.mxu0 }
 0x166   :  { %v295_v44 = vadd.f32 %v294_v38, %v197_v37 }
 0x167   :  { %v1910_v39 = vpop.f32.mrf.mxu0 }
 0x168   :  { %v310_v52 = vadd.f32 %v1924_v40, %v1910_v39 }
 0x169   :  { %v207_v41 = vpop.f32.mrf.mxu0 }
 0x16a   :  { %v305_v53 = vadd.f32 %v304_v47, %v207_v41 }
 0x16b   :  { %v1935_v42 = vpop.f32.mrf.mxu0 }
 0x16c   :  { %v425_v49 = vadd.f32 %v1935_v42, %v300_v43 }
 0x16d   :  { %v405_v48 = vpop.f32.mrf.mxu0 }
 0x16e   :  { %v424_v50 = vadd.f32 %v405_v48, %v295_v44  ;;  %v449_v56 = vadd.f32 %v2380_v45, %v425_v49  ;;  %v2392_v44 = vpop.permute.xlu1 %500 }
 0x16f   :  { %v1938_v51 = vpop.f32.mrf.mxu0 }
 0x170   :  { %v448_v54 = vadd.f32 %v2382_v46, %v424_v50  ;;  %v427_v57 = vadd.f32 %v1938_v51, %v310_v52  ;;  %v2398_v52 = vpop.permute.xlu0 %496 }
 0x171   :  { %v415_v55 = vpop.f32.mrf.mxu0 }
 0x172   :  { %v426_v58 = vadd.f32 %v415_v55, %v305_v53  ;;  %v452_v61 = vadd.f32 %v449_v56, %v448_v54  ;;  %v451_v0 = vadd.f32 %v2388_v60, %v427_v57  ;;  %v2394_v50 = vpop.permute.xlu1 %520 }
 0x174   :  { %v450_v62 = vadd.f32 %v2386_v59, %v426_v58 }
 0x176   :  { %v453_v63 = vadd.f32 %v452_v61, %v450_v62  ;;  %v2396_v51 = vpop.permute.xlu1 %492 }
 0x178   :  { %v454_v1 = vadd.f32 %v453_v63, %v451_v0 }
 0x17a   :  { %v455_v4 = vrot.slane %v454_v1, 4  ;;  %v2400_v53 = vpop.permute.xlu1 %488 }
 0x17c   :  { %v456_v5 = vadd.f32 %v455_v4, %v454_v1 }
 0x17e   :  { %v457_v8 = vrot.slane %v456_v5, 2  ;;  %v2408_v4 = vpop.permute.xlu1 %512 }
 0x180   :  { %v458_v14 = vadd.f32 %v457_v8, %v456_v5  ;;  %v2410_v5 = vld [vmem:[#allocation8] sm:$0xff] }
 0x181   :  { %1947 = vmatprep.mubr.msk.f32.mxu1 %vm118_vm0, %v2410_v5 }
 0x182   :  { %v459_v15 = vrot.slane %v458_v14, 1 }
 0x184   :  { %v460_v16 = vadd.f32 %v459_v15, %v458_v14 }
 0x186   :  { %v462_v18 = vmul.f32 0.03125, %v460_v16 }
 0x188   :  { %v463_v19 = vsub.f32 %v448_v54, %v462_v18  ;;  %v464_v20 = vsub.f32 %v449_v56, %v462_v18  ;;  %v465_v21 = vsub.f32 %v450_v62, %v462_v18  ;;  %v466_v22 = vsub.f32 %v451_v0, %v462_v18  ;;  %v2402_v54 = vpop.permute.xlu0 %516 }
 0x18a   :  { %v467_v24 = vmul.f32 %v463_v19, %v463_v19  ;;  %v468_v26 = vmul.f32 %v464_v20, %v464_v20  ;;  %v469_v29 = vmul.f32 %v465_v21, %v465_v21  ;;  %v470_v36 = vmul.f32 %v466_v22, %v466_v22 }
 0x18c   :  { %v471_v35 = vadd.f32 %v468_v26, %v467_v24  ;;  %v2414_v15 = vpop.permute.xlu0 %508  ;;  %v993_v24 = vpop.permute.xlu1 %992  ;;  %v2424_v26 = vld [vmem:[#allocation8 + $0x28] sm:$0xff] }
 0x18e   :  { %v472_v37 = vadd.f32 %v471_v35, %v469_v29  ;;  %v2426_v29 = vld [vmem:[#allocation8 + $0x30] sm:$0xff] }
 0x18f   :  { %v2432_v35 = vld [vmem:[#allocation3 + $0x30] sm:$0xff] }
 0x190   :  { %v473_v38 = vadd.f32 %v472_v37, %v470_v36  ;;  %v2440_v36 = vld [vmem:[#allocation8 + $0x38] sm:$0xff]  ;;  %v2445_v37 = vld [vmem:[#allocation3 + $0x28] sm:$0xff] }
 0x192   :  { %v474_v39 = vrot.slane %v473_v38, 4 }
 0x194   :  { %v475_v40 = vadd.f32 %v474_v39, %v473_v38  ;;  %v2454_v38 = vld [vmem:[#allocation3 + $0x20] sm:$0xff] }
 0x196   :  { %v476_v41 = vrot.slane %v475_v40, 2 }
 0x198   :  { %v477_v42 = vadd.f32 %v476_v41, %v475_v40 }
 0x19a   :  { %v478_v43 = vrot.slane %v477_v42, 1 }
 0x19c   :  { %v479_v47 = vadd.f32 %v478_v43, %v477_v42  ;;  %v2478_v42 = vld [vmem:[#allocation8 + $0x8] sm:$0xff]  ;;  %v2482_v43 = vld [vmem:[#allocation8 + $0x10] sm:$0xff] }
 0x19e   :  { %v480_v48 = vmul.f32 0.03125, %v479_v47 }
 0x1a0   :  { %v481_v49 = vadd.f32 1e-05, %v480_v48 }
 0x1a2   :  { %2099 = vrsqrt.f32 %v481_v49  ;;  %v2494_v49 = vld [vmem:[#allocation8 + $0x18] sm:$0xff] }
 0x1af   :  { %v2100_v55 = vpop.eup %2099 }
 0x1b0   :  { %v486_v56 = vmul.f32 %v2100_v55, %v466_v22  ;;  %v484_v57 = vmul.f32 %v2100_v55, %v464_v20  ;;  %v485_v58 = vmul.f32 %v2100_v55, %v465_v21  ;;  %v483_v61 = vmul.f32 %v2100_v55, %v463_v19 }
 0x1b2   :  { %v506_v62 = vmul.f32 %v2392_v44, %v486_v56  ;;  %v504_v63 = vmul.f32 %v2396_v51, %v484_v57  ;;  %v505_v0 = vmul.f32 %v2398_v52, %v485_v58  ;;  %v503_v1 = vmul.f32 %v2400_v53, %v483_v61  ;;  %v2500_v56 = vld [vmem:[#allocation8 + $0x40] sm:$0xff] }
 0x1b4   :  { %v526_v8 = vadd.f32 %v2394_v50, %v506_v62  ;;  %v525_v14 = vadd.f32 %v2402_v54, %v505_v0  ;;  %v524_v19 = vadd.f32 %v2408_v4, %v504_v63  ;;  %v523_v20 = vadd.f32 %v2414_v15, %v503_v1  ;;  %v2516_v62 = vld [vmem:[#allocation8 + $0x48] sm:$0xff]  ;;  %v2522_v63 = vld [vmem:[#allocation8 + $0x50] sm:$0xff]  ;;  %v2532_v1 = vld [vmem:[#allocation8 + $0x58] sm:$0xff] }
 0x1b6   :  { %v530_v16 = vmax.f32 %v526_v8, 0.0  ;;  %v529_v18 = vmax.f32 %v525_v14, 0.0  ;;  %v528_v21 = vmax.f32 %v524_v19, 0.0  ;;  %v527_v22 = vmax.f32 %v523_v20, 0.0 }
 0x1b8   :  { %537 = vrot.lane.b32.xlu1 %v530_v16, %s2198_s0  ;;  %1953 = vmatprep.subr.mxu0 %v530_v16 }
 0x1b9   :  { %535 = vrot.lane.b32.xlu0 %v529_v18, %s2198_s0  ;;  %1954 = vmatpush3.msra.mxu0 %v530_v16 }
 0x1ba   :  { %1955 = vmatprep.subr.mxu0 %v529_v18 }
 0x1bb   :  { %1956 = vmatpush3.msra.mxu0 %v529_v18 }
 0x1bc   :  { %533 = vrot.lane.b32.xlu1 %v528_v21, %s2198_s0  ;;  %1957 = vmatprep.subr.mxu0 %v528_v21 }
 0x1bd   :  { %531 = vrot.lane.b32.xlu0 %v527_v22, %s2198_s0  ;;  %1958 = vmatpush3.msra.mxu0 %v528_v21 }
 0x1be   :  { %1959 = vmatprep.subr.mxu0 %v527_v22 }
 0x1bf   :  { %1960 = vmatpush3.msra.mxu0 %v527_v22 }
 0x1c0   :  { %743 = vrot.lane.b32.xlu1 %v530_v16, %s2199_s2  ;;  %1981 = vmatprep.subr.msk.mxu0 %vm1799_vm1, %v993_v24 }
 0x1c1   :  { %741 = vrot.lane.b32.xlu0 %v529_v18, %s2199_s2  ;;  %1962 = vmatmul.mubr.msk.f32.vlgmr.msra.gmra.mxu0 %vm118_vm0, %v2424_v26 }
 0x1c2   :  { %1982 = vmatpush3.msk.msra.mxu0 %vm1799_vm1, %v993_v24  ;;  %1964 = vmatprep.mubr.msk.f32.mxu0 %vm118_vm0, %v2426_v29 }
 0x1c4   :  { %990 = vrot.lane.b32.xlu1 %v2432_v35, %s2198_s0 }
 0x1c5   :  { %739 = vrot.lane.b32.xlu0 %v528_v21, %s2199_s2  ;;  %1965 = vmatmul.mubr.msk.f32.gmra.mxu0 %vm118_vm0, %v2440_v36 }
 0x1c6   :  { %1989 = vmatprep.mubr.msk.f32.mxu0 %vm118_vm0, %v2250_v2 }
 0x1c8   :  { %988 = vrot.lane.b32.xlu1 %v2445_v37, %s2198_s0 }
 0x1c9   :  { %737 = vrot.lane.b32.xlu0 %v527_v22, %s2199_s2 }
 0x1cc   :  { %1174 = vrot.lane.b32.xlu1 %v2372_v33, %s2199_s2 }
 0x1cd   :  { %986 = vrot.lane.b32.xlu0 %v2454_v38, %s2198_s0 }
 0x1d0   :  { %1170 = vrot.lane.b32.xlu1 %v2445_v37, %s2199_s2 }
 0x1d1   :  { %1172 = vrot.lane.b32.xlu0 %v2432_v35, %s2199_s2 }
 0x1d5   :  { %1168 = vrot.lane.b32.xlu0 %v2454_v38, %s2199_s2 }
 0x22a   :  { %v538_v2 = vpop.permute.xlu1 %537 }
 0x22b   :  { %v536_v39 = vpop.permute.xlu0 %535  ;;  %1939 = vmatprep.subr.msk.mxu1 %vm1799_vm1, %v538_v2 }
 0x22c   :  { %1940 = vmatpush3.msk.msra.mxu1 %vm1799_vm1, %v538_v2 }
 0x22d   :  { %1941 = vmatprep.subr.msk.mxu1 %vm1799_vm1, %v536_v39 }
 0x22e   :  { %v534_v40 = vpop.permute.xlu1 %533  ;;  %1942 = vmatpush3.msk.msra.mxu1 %vm1799_vm1, %v536_v39 }
 0x22f   :  { %v532_v41 = vpop.permute.xlu0 %531  ;;  %1943 = vmatprep.subr.msk.mxu1 %vm1799_vm1, %v534_v40 }
 0x230   :  { %1944 = vmatpush3.msk.msra.mxu1 %vm1799_vm1, %v534_v40 }
 0x231   :  { %1945 = vmatprep.subr.msk.mxu1 %vm1799_vm1, %v532_v41 }
 0x232   :  { %v744_v47 = vpop.permute.xlu1 %743  ;;  %1946 = vmatpush3.msk.msra.mxu1 %vm1799_vm1, %v532_v41 }
 0x233   :  { %v742_v48 = vpop.permute.xlu0 %741  ;;  %1967 = vmatprep.subr.msk.mxu1 %vm1800_vm2, %v744_v47  ;;  %1948 = vmatmul.mubr.msk.f32.vlgmr.msra.gmra.mxu1 %vm118_vm0, %v2478_v42 }
 0x234   :  { %1968 = vmatpush3.msk.msra.mxu1 %vm1800_vm2, %v744_v47  ;;  %1950 = vmatprep.mubr.msk.f32.mxu1 %vm118_vm0, %v2482_v43 }
 0x235   :  { %1969 = vmatprep.subr.msk.mxu1 %vm1800_vm2, %v742_v48 }
 0x236   :  { %1970 = vmatpush3.msk.msra.mxu1 %vm1800_vm2, %v742_v48  ;;  %v991_v55 = vpop.permute.xlu1 %990 }
 0x237   :  { %v740_v57 = vpop.permute.xlu0 %739  ;;  %1983 = vmatprep.subr.msk.mxu0 %vm1799_vm1, %v991_v55  ;;  %1951 = vmatmul.mubr.msk.f32.gmra.mxu1 %vm118_vm0, %v2494_v49 }
 0x238   :  { %1971 = vmatprep.subr.msk.mxu1 %vm1800_vm2, %v740_v57  ;;  %1984 = vmatpush3.msk.msra.mxu0 %vm1799_vm1, %v991_v55 }
 0x239   :  { %1972 = vmatpush3.msk.msra.mxu1 %vm1800_vm2, %v740_v57  ;;  %1975 = vmatprep.mubr.msk.f32.mxu1 %vm118_vm0, %v2500_v56 }
 0x23a   :  { %v989_v58 = vpop.permute.xlu1 %988 }
 0x23b   :  { %v738_v61 = vpop.permute.xlu0 %737  ;;  %1985 = vmatprep.subr.msk.mxu0 %vm1799_vm1, %v989_v58 }
 0x23c   :  { %1973 = vmatprep.subr.msk.mxu1 %vm1800_vm2, %v738_v61  ;;  %1986 = vmatpush3.msk.msra.mxu0 %vm1799_vm1, %v989_v58 }
 0x23d   :  { %1974 = vmatpush3.msk.msra.mxu1 %vm1800_vm2, %v738_v61 }
 0x23e   :  { %1976 = vmatmul.mubr.msk.f32.vlgmr.msra.gmra.mxu1 %vm118_vm0, %v2516_v62  ;;  %1995 = vmatprep.subr.mxu1 %v2372_v33  ;;  %v1175_v8 = vpop.permute.xlu1 %1174 }
 0x23f   :  { %1996 = vmatpush3.msra.mxu1 %v2372_v33  ;;  %v987_v0 = vpop.permute.xlu0 %986  ;;  %1978 = vmatprep.mubr.msk.f32.mxu1 %vm118_vm0, %v2522_v63 }
 0x240   :  { %1987 = vmatprep.subr.msk.mxu0 %vm1799_vm1, %v987_v0  ;;  %1997 = vmatprep.subr.mxu1 %v2432_v35 }
 0x241   :  { %1988 = vmatpush3.msk.msra.mxu0 %vm1799_vm1, %v987_v0  ;;  %1998 = vmatpush3.msra.mxu1 %v2432_v35 }
 0x242   :  { %1979 = vmatmul.mubr.msk.f32.gmra.mxu1 %vm118_vm0, %v2532_v1  ;;  %1990 = vmatmul.mubr.msk.f32.vlgmr.msra.gmra.mxu0 %vm118_vm0, %v2323_v23  ;;  %v1171_v14 = vpop.permute.xlu1 %1170 }
 0x243   :  { %1999 = vmatprep.subr.mxu1 %v2445_v37  ;;  %2009 = vmatprep.subr.msk.mxu0 %vm1800_vm2, %v1175_v8  ;;  %v1173_v33 = vpop.permute.xlu0 %1172 }
 0x244   :  { %2000 = vmatpush3.msra.mxu1 %v2445_v37  ;;  %2010 = vmatpush3.msk.msra.mxu0 %vm1800_vm2, %v1175_v8 }
 0x245   :  { %2001 = vmatprep.subr.mxu1 %v2454_v38  ;;  %2011 = vmatprep.subr.msk.mxu0 %vm1800_vm2, %v1173_v33 }
 0x246   :  { %1992 = vmatprep.mubr.msk.f32.mxu0 %vm118_vm0, %v2328_v25  ;;  %2002 = vmatpush3.msra.mxu1 %v2454_v38 }
 0x247   :  { %2003 = vmatprep.mubr.msk.f32.mxu1 %vm118_vm0, %v2252_v3  ;;  %2012 = vmatpush3.msk.msra.mxu0 %vm1800_vm2, %v1173_v33  ;;  %v1169_v23 = vpop.permute.xlu0 %1168  ;;  %v2203_v3 = vmov 3  }
 0x248   :  { %1993 = vmatmul.mubr.msk.f32.gmra.mxu0 %vm118_vm0, %v2340_v27  ;;  %2004 = vmatmul.mubr.msk.f32.vlgmr.msra.gmra.mxu1 %vm118_vm0, %v2262_v6 }
 0x249   :  { %2013 = vmatprep.subr.msk.mxu0 %vm1800_vm2, %v1171_v14  ;;  %2006 = vmatprep.mubr.msk.f32.mxu1 %vm118_vm0, %v2264_v7 }
 0x24a   :  { %2014 = vmatpush3.msk.msra.mxu0 %vm1800_vm2, %v1171_v14  ;;  %2017 = vmatprep.mubr.msk.f32.mxu0 %vm118_vm0, %v2344_v28 }
 0x24b   :  { %2015 = vmatprep.subr.msk.mxu0 %vm1800_vm2, %v1169_v23  ;;  %2089 = vset.pattern.permute.xlu1 %v2203_v3 }
 0x24c   :  { %2016 = vmatpush3.msk.msra.mxu0 %vm1800_vm2, %v1169_v23  ;;  %2007 = vmatmul.mubr.msk.f32.gmra.mxu1 %vm118_vm0, %v2270_v9 }
 0x24d   :  { %2018 = vmatmul.mubr.msk.f32.vlgmr.msra.gmra.mxu0 %vm118_vm0, %v2356_v30  ;;  %2031 = vmatprep.mubr.msk.f32.mxu1 %vm118_vm0, %v2410_v5 }
 0x24e   :  { %2020 = vmatprep.mubr.msk.f32.mxu0 %vm118_vm0, %v2360_v31  ;;  %2090 = vset.pattern.permute.xlu0 %v2203_v3 }
 0x251   :  { %2021 = vmatmul.mubr.msk.f32.gmra.mxu0 %vm118_vm0, %v2368_v32 }
 0x252   :  { %2045 = vmatprep.mubr.msk.f32.mxu0 %vm118_vm0, %v2376_v34 }
 0x281   :  { %v1963_v6 = vpop.f32.mrf.mxu0 }
 0x283   :  { %v718_v7 = vpop.f32.mrf.mxu0 }
 0x285   :  { %v1966_v25 = vpop.f32.mrf.mxu0 }
 0x287   :  { %v728_v30 = vpop.f32.mrf.mxu0 }
 0x2f3   :  { %v1949_v9 = vpop.f32.mrf.mxu1 }
 0x2f4   :  { %v724_v18 = vadd.f32 %v1963_v6, %v1949_v9 }
 0x2f5   :  { %v621_v27 = vpop.f32.mrf.mxu1 }
 0x2f6   :  { %v719_v19 = vadd.f32 %v718_v7, %v621_v27 }
 0x2f7   :  { %v1952_v28 = vpop.f32.mrf.mxu1 }
 0x2f8   :  { %v734_v21 = vadd.f32 %v1966_v25, %v1952_v28 }
 0x2f9   :  { %v631_v5 = vpop.f32.mrf.mxu1 }
 0x2fa   :  { %v729_v16 = vadd.f32 %v728_v30, %v631_v5 }
 0x2fe   :  { %v1977_v31 = vpop.f32.mrf.mxu1 }
 0x2ff   :  { %v2588_v20 = vadd.f32 %v1977_v31, %v724_v18 }
 0x300   :  { %v827_v32 = vpop.f32.mrf.mxu1 }
 0x301   :  { %v2590_v34 = vadd.f32 %v827_v32, %v719_v19 }
 0x302   :  { %v1980_v22 = vpop.f32.mrf.mxu1  ;;  %v1991_v24 = vpop.f32.mrf.mxu0 }
 0x303   :  { %v2592_v35 = vadd.f32 %v1980_v22, %v734_v21 }
 0x304   :  { %v837_v37 = vpop.f32.mrf.mxu1  ;;  %v1064_v38 = vpop.f32.mrf.mxu0 }
 0x305   :  { %v2594_v2 = vadd.f32 %v837_v37, %v729_v16 }
 0x308   :  { %v1994_v39 = vpop.f32.mrf.mxu0  ;;  %v2005_v40 = vpop.f32.mrf.mxu1 }
 0x309   :  { %v1155_v57 = vadd.f32 %v2005_v40, %v1991_v24 }
 0x30a   :  { %v1074_v41 = vpop.f32.mrf.mxu0  ;;  %v1149_v47 = vpop.f32.mrf.mxu1 }
 0x30b   :  { %v1150_v58 = vadd.f32 %v1149_v47, %v1064_v38 }
 0x30c   :  { %v2008_v48 = vpop.f32.mrf.mxu1 }
 0x30d   :  { %v2019_v55 = vpop.f32.mrf.mxu0  ;;  %v1165_v23 = vadd.f32 %v2008_v48, %v1994_v39 }
 0x30e   :  { %v1159_v61 = vpop.f32.mrf.mxu1  ;;  %v1266_v8 = vadd.f32 %v2019_v55, %v1155_v57 }
 0x30f   :  { %v1246_v0 = vpop.f32.mrf.mxu0  ;;  %v1160_v3 = vadd.f32 %v1159_v61, %v1074_v41 }
 0x310   :  { %v1265_v33 = vadd.f32 %v1246_v0, %v1150_v58  ;;  %v1270_v9 = vadd.f32 %v1266_v8, %v2380_v45 }
 0x311   :  { %v2022_v14 = vpop.f32.mrf.mxu0 }
 0x312   :  { %v1269_v6 = vadd.f32 %v1265_v33, %v2382_v46  ;;  %v1268_v25 = vadd.f32 %v2022_v14, %v1165_v23 }
 0x313   :  { %v1256_v7 = vpop.f32.mrf.mxu0 }
 0x314   :  { %v1267_v27 = vadd.f32 %v1256_v7, %v1160_v3  ;;  %v1273_v28 = vadd.f32 %v1270_v9, %v1269_v6  ;;  %v1272_v5 = vadd.f32 %v1268_v25, %v2388_v60 }
 0x316   :  { %v1271_v30 = vadd.f32 %v1267_v27, %v2386_v59 }
 0x318   :  { %v1274_v16 = vadd.f32 %v1273_v28, %v1271_v30 }
 0x31a   :  { %v1275_v18 = vadd.f32 %v1274_v16, %v1272_v5 }
 0x31c   :  { %v1276_v31 = vrot.slane %v1275_v18, 4 }
 0x31e   :  { %v1277_v19 = vadd.f32 %v1276_v31, %v1275_v18 }
 0x320   :  { %v1278_v32 = vrot.slane %v1277_v19, 2 }
 0x322   :  { %v1279_v21 = vadd.f32 %v1278_v32, %v1277_v19 }
 0x324   :  { %v1280_v22 = vrot.slane %v1279_v21, 1 }
 0x326   :  { %v1281_v24 = vadd.f32 %v1280_v22, %v1279_v21 }
 0x328   :  { %v1282_v37 = vmul.f32 0.03125, %v1281_v24 }
 0x32a   :  { %v1283_v46 = vsub.f32 %v1269_v6, %v1282_v37  ;;  %v1284_v38 = vsub.f32 %v1270_v9, %v1282_v37  ;;  %v1285_v39 = vsub.f32 %v1271_v30, %v1282_v37  ;;  %v1286_v45 = vsub.f32 %v1272_v5, %v1282_v37 }
 0x32c   :  { %v1287_v40 = vmul.f32 %v1283_v46, %v1283_v46  ;;  %v1288_v41 = vmul.f32 %v1284_v38, %v1284_v38  ;;  %v1289_v47 = vmul.f32 %v1285_v39, %v1285_v39  ;;  %v1290_v59 = vmul.f32 %v1286_v45, %v1286_v45 }
 0x32e   :  { %v1291_v48 = vadd.f32 %v1288_v41, %v1287_v40 }
 0x330   :  { %v1292_v55 = vadd.f32 %v1291_v48, %v1289_v47 }
 0x332   :  { %v1293_v60 = vadd.f32 %v1292_v55, %v1290_v59 }
 0x334   :  { %v1294_v57 = vrot.slane %v1293_v60, 4 }
 0x336   :  { %v1295_v58 = vadd.f32 %v1294_v57, %v1293_v60 }
 0x338   :  { %v1296_v61 = vrot.slane %v1295_v58, 2 }
 0x33a   :  { %v1297_v0 = vadd.f32 %v1296_v61, %v1295_v58 }
 0x33c   :  { %v1298_v8 = vrot.slane %v1297_v0, 1 }
 0x33e   :  { %v1299_v33 = vadd.f32 %v1298_v8, %v1297_v0 }
 0x340   :  { %v1300_v14 = vmul.f32 0.03125, %v1299_v33 }
 0x342   :  { %v1301_v23 = vadd.f32 1e-05, %v1300_v14 }
 0x344   :  { %2101 = vrsqrt.f32 %v1301_v23 }
 0x351   :  { %v2102_v3 = vpop.eup %2101 }
 0x352   :  { %v1305_v6 = vmul.f32 %v2102_v3, %v1285_v39  ;;  %v1306_v7 = vmul.f32 %v2102_v3, %v1286_v45  ;;  %v1304_v9 = vmul.f32 %v2102_v3, %v1284_v38  ;;  %v1303_v25 = vmul.f32 %v2102_v3, %v1283_v46 }
 0x354   :  { %v1309_v27 = vmul.f32 %v1305_v6, %v2398_v52  ;;  %v1310_v28 = vmul.f32 %v1306_v7, %v2392_v44  ;;  %v1308_v30 = vmul.f32 %v1304_v9, %v2396_v51  ;;  %v1307_v5 = vmul.f32 %v1303_v25, %v2400_v53 }
 0x355   :  { %v2205_v52 = vmov 5   ;;  %v2206_v53 = vmov 6  }
 0x356   :  { %v1314_v16 = vadd.f32 %v1310_v28, %v2394_v50  ;;  %v1313_v18 = vadd.f32 %v1309_v27, %v2402_v54  ;;  %v1312_v32 = vadd.f32 %v1308_v30, %v2408_v4  ;;  %v1311_v21 = vadd.f32 %v1307_v5, %v2414_v15 }
 0x357   :  { %v2204_v50 = vmov 4  }
 0x358   :  { %v1318_v31 = vmax.f32 %v1314_v16, 0.0  ;;  %v1317_v19 = vmax.f32 %v1313_v18, 0.0  ;;  %v1316_v44 = vmax.f32 %v1312_v32, 0.0  ;;  %v1315_v51 = vmax.f32 %v1311_v21, 0.0 }
 0x35a   :  { %1325 = vrot.lane.b32.xlu1 %v1318_v31, %s2198_s0  ;;  %2037 = vmatprep.subr.mxu0 %v1318_v31 }
 0x35b   :  { %1323 = vrot.lane.b32.xlu0 %v1317_v19, %s2198_s0  ;;  %2038 = vmatpush3.msra.mxu0 %v1318_v31 }
 0x35c   :  { %2039 = vmatprep.subr.mxu0 %v1317_v19 }
 0x35d   :  { %2040 = vmatpush3.msra.mxu0 %v1317_v19 }
 0x35e   :  { %1321 = vrot.lane.b32.xlu1 %v1316_v44, %s2198_s0  ;;  %2041 = vmatprep.subr.mxu0 %v1316_v44 }
 0x35f   :  { %1319 = vrot.lane.b32.xlu0 %v1315_v51, %s2198_s0  ;;  %2042 = vmatpush3.msra.mxu0 %v1316_v44 }
 0x360   :  { %2043 = vmatprep.subr.mxu0 %v1315_v51 }
 0x361   :  { %2044 = vmatpush3.msra.mxu0 %v1315_v51 }
 0x362   :  { %1507 = vrot.lane.b32.xlu1 %v1318_v31, %s2199_s2  ;;  %2046 = vmatmul.mubr.msk.f32.vlgmr.msra.gmra.mxu0 %vm118_vm0, %v2424_v26 }
 0x363   :  { %1505 = vrot.lane.b32.xlu0 %v1317_v19, %s2199_s2  ;;  %2048 = vmatprep.mubr.msk.f32.mxu0 %vm118_vm0, %v2426_v29 }
 0x366   :  { %1503 = vrot.lane.b32.xlu1 %v1316_v44, %s2199_s2  ;;  %2049 = vmatmul.mubr.msk.f32.gmra.mxu0 %vm118_vm0, %v2440_v36 }
 0x367   :  { %1501 = vrot.lane.b32.xlu0 %v1315_v51, %s2199_s2 }
 0x36a   :  { %851 = vperm.xlu1 %2089, %v2282_v11  }
 0x36b   :  { %855 = vperm.xlu0 %2090, %v2277_v10  }
 0x36e   :  { %859 = vperm.xlu1 %2089, %v2291_v12  }
 0x36f   :  { %2091 = vset.pattern.permute.xlu0 %v2204_v50 }
 0x370   :  { %905 = vperm.xlu0 %2091, %v2282_v11  }
 0x372   :  { %863 = vperm.xlu1 %2089, %v2296_v13  }
 0x374   :  { %2093 = vset.pattern.permute.xlu0 %v2205_v52 }
 0x375   :  { %925 = vperm.xlu0 %2093, %v2282_v11  }
 0x376   :  { %2092 = vset.pattern.permute.xlu1 %v2204_v50 }
 0x377   :  { %909 = vperm.xlu1 %2092, %v2277_v10  }
 0x379   :  { %933 = vperm.xlu0 %2093, %v2291_v12  }
 0x37b   :  { %913 = vperm.xlu1 %2092, %v2291_v12  }
 0x37d   :  { %2097 = vset.pattern.permute.xlu0 %v2206_v53 }
 0x37e   :  { %949 = vperm.xlu0 %2097, %v2282_v11  }
 0x37f   :  { %2094 = vset.pattern.permute.xlu1 %v2205_v52 }
 0x380   :  { %929 = vperm.xlu1 %2094, %v2277_v10  }
 0x382   :  { %961 = vperm.xlu0 %2097, %v2296_v13  }
 0x384   :  { %2095 = vset.pattern.permute.xlu1 %v2204_v50 }
 0x385   :  { %917 = vperm.xlu1 %2095, %v2296_v13  }
 0x389   :  { %2096 = vset.pattern.permute.xlu1 %v2205_v52 }
 0x38a   :  { %937 = vperm.xlu1 %2096, %v2296_v13  }
 0x38e   :  { %2098 = vset.pattern.permute.xlu1 %v2206_v53 }
 0x38f   :  { %953 = vperm.xlu1 %2098, %v2277_v10  }
 0x393   :  { %957 = vperm.xlu1 %2098, %v2291_v12  }
 0x3cc   :  { %v1326_v54 = vpop.permute.xlu1 %1325 }
 0x3cd   :  { %v1324_v4 = vpop.permute.xlu0 %1323  ;;  %2023 = vmatprep.subr.msk.mxu1 %vm1799_vm1, %v1326_v54 }
 0x3ce   :  { %2024 = vmatpush3.msk.msra.mxu1 %vm1799_vm1, %v1326_v54 }
 0x3cf   :  { %2025 = vmatprep.subr.msk.mxu1 %vm1799_vm1, %v1324_v4 }
 0x3d0   :  { %2026 = vmatpush3.msk.msra.mxu1 %vm1799_vm1, %v1324_v4  ;;  %v1322_v11 = vpop.permute.xlu1 %1321 }
 0x3d1   :  { %v1320_v13 = vpop.permute.xlu0 %1319  ;;  %2027 = vmatprep.subr.msk.mxu1 %vm1799_vm1, %v1322_v11 }
 0x3d2   :  { %2028 = vmatpush3.msk.msra.mxu1 %vm1799_vm1, %v1322_v11 }
 0x3d3   :  { %2029 = vmatprep.subr.msk.mxu1 %vm1799_vm1, %v1320_v13 }
 0x3d4   :  { %v1508_v10 = vpop.permute.xlu1 %1507  ;;  %2030 = vmatpush3.msk.msra.mxu1 %vm1799_vm1, %v1320_v13 }
 0x3d5   :  { %v1506_v12 = vpop.permute.xlu0 %1505  ;;  %2032 = vmatmul.mubr.msk.f32.vlgmr.msra.gmra.mxu1 %vm118_vm0, %v2478_v42  ;;  %2051 = vmatprep.subr.msk.mxu1 %vm1800_vm2, %v1508_v10 }
 0x3d6   :  { %2052 = vmatpush3.msk.msra.mxu1 %vm1800_vm2, %v1508_v10  ;;  %2034 = vmatprep.mubr.msk.f32.mxu1 %vm118_vm0, %v2482_v43 }
 0x3d7   :  { %2053 = vmatprep.subr.msk.mxu1 %vm1800_vm2, %v1506_v12 }
 0x3d8   :  { %v1504_v15 = vpop.permute.xlu1 %1503  ;;  %2054 = vmatpush3.msk.msra.mxu1 %vm1800_vm2, %v1506_v12 }
 0x3d9   :  { %2035 = vmatmul.mubr.msk.f32.gmra.mxu1 %vm118_vm0, %v2494_v49  ;;  %2055 = vmatprep.subr.msk.mxu1 %vm1800_vm2, %v1504_v15  ;;  %v1502_v26 = vpop.permute.xlu0 %1501 }
 0x3da   :  { %2056 = vmatpush3.msk.msra.mxu1 %vm1800_vm2, %v1504_v15  ;;  %2059 = vmatprep.mubr.msk.f32.mxu1 %vm118_vm0, %v2500_v56 }
 0x3db   :  { %2057 = vmatprep.subr.msk.mxu1 %vm1800_vm2, %v1502_v26 }
 0x3dc   :  { %2058 = vmatpush3.msk.msra.mxu1 %vm1800_vm2, %v1502_v26 }
 0x3dd   :  { %2060 = vmatmul.mubr.msk.f32.vlgmr.msra.gmra.mxu1 %vm118_vm0, %v2516_v62 }
 0x3de   :  { %2062 = vmatprep.mubr.msk.f32.mxu1 %vm118_vm0, %v2522_v63 }
 0x3e1   :  { %2063 = vmatmul.mubr.msk.f32.gmra.mxu1 %vm118_vm0, %v2532_v1 }
 0x3e5   :  { %v2684_v29 = vpop.permute.xlu1 %851 }
 0x3e6   :  { %v866_v36 = vadd.f32 %v2684_v29, %v2590_v34  ;;  %v2688_v42 = vpop.permute.xlu0 %855 }
 0x3e7   :  { %v867_v17 = vadd.f32 %v2688_v42, %v2588_v20 }
 0x3e9   :  { %v870_v43 = vadd.f32 %v867_v17, %v866_v36  ;;  %v2692_v49 = vpop.permute.xlu1 %859 }
 0x3ea   :  { %v868_v56 = vadd.f32 %v2692_v49, %v2594_v2 }
 0x3eb   :  { %v2706_v25 = vpop.permute.xlu0 %905 }
 0x3ec   :  { %v871_v62 = vadd.f32 %v870_v43, %v868_v56 }
 0x3ed   :  { %v2696_v63 = vpop.permute.xlu1 %863 }
 0x3ee   :  { %v869_v1 = vadd.f32 %v2696_v63, %v2592_v35 }
 0x3f0   :  { %v872_v22 = vadd.f32 %v871_v62, %v869_v1  ;;  %v2710_v28 = vpop.permute.xlu0 %925 }
 0x3f2   :  { %v873_v24 = vrot.slane %v872_v22, 4  ;;  %v2700_v61 = vpop.permute.xlu1 %909 }
 0x3f4   :  { %v874_v34 = vadd.f32 %v873_v24, %v872_v22  ;;  %v2714_v5 = vpop.permute.xlu0 %933 }
 0x3f6   :  { %v875_v37 = vrot.slane %v874_v34, 2  ;;  %v2702_v14 = vpop.permute.xlu1 %913 }
 0x3f8   :  { %v876_v46 = vadd.f32 %v875_v37, %v874_v34 }
 0x3f9   :  { %v2722_v53 = vpop.permute.xlu0 %949 }
 0x3fa   :  { %v877_v38 = vrot.slane %v876_v46, 1 }
 0x3fb   :  { %v2704_v7 = vpop.permute.xlu1 %929 }
 0x3fc   :  { %v878_v39 = vadd.f32 %v877_v38, %v876_v46 }
 0x3fe   :  { %v879_v20 = vmul.f32 0.03125, %v878_v39 }
 0x400   :  { %v882_v45 = vsub.f32 %v868_v56, %v879_v20  ;;  %v883_v40 = vsub.f32 %v869_v1, %v879_v20  ;;  %v880_v41 = vsub.f32 %v866_v36, %v879_v20  ;;  %v881_v47 = vsub.f32 %v867_v17, %v879_v20  ;;  %v2708_v27 = vpop.permute.xlu1 %917  ;;  %v2732_v56 = vpop.permute.xlu0 %961 }
 0x402   :  { %v884_v48 = vmul.f32 %v880_v41, %v880_v41  ;;  %v885_v2 = vmul.f32 %v881_v47, %v881_v47  ;;  %v886_v59 = vmul.f32 %v882_v45, %v882_v45  ;;  %v887_v60 = vmul.f32 %v883_v40, %v883_v40 }
 0x404   :  { %v888_v55 = vadd.f32 %v885_v2, %v884_v48 }
 0x405   :  { %v2712_v30 = vpop.permute.xlu1 %937 }
 0x406   :  { %v889_v57 = vadd.f32 %v888_v55, %v886_v59 }
 0x408   :  { %v890_v58 = vadd.f32 %v889_v57, %v887_v60 }
 0x40a   :  { %v891_v35 = vrot.slane %v890_v58, 4  ;;  %v2716_v21 = vpop.permute.xlu1 %953 }
 0x40c   :  { %v892_v0 = vadd.f32 %v891_v35, %v890_v58 }
 0x40e   :  { %v893_v8 = vrot.slane %v892_v0, 2  ;;  %v2728_v26 = vpop.permute.xlu1 %957 }
 0x410   :  { %v894_v33 = vadd.f32 %v893_v8, %v892_v0 }
 0x412   :  { %v895_v23 = vrot.slane %v894_v33, 1 }
 0x414   :  { %v896_v3 = vadd.f32 %v895_v23, %v894_v33 }
 0x416   :  { %v897_v6 = vmul.f32 0.03125, %v896_v3 }
 0x418   :  { %v898_v9 = vadd.f32 1e-05, %v897_v6 }
 0x41a   :  { %2103 = vrsqrt.f32 %v898_v9 }
 0x422   :  { %v2047_v48 = vpop.f32.mrf.mxu0 }
 0x424   :  { %v1482_v55 = vpop.f32.mrf.mxu0 }
 0x426   :  { %v2050_v57 = vpop.f32.mrf.mxu0 }
 0x427   :  { %v2104_v16 = vpop.eup %2103 }
 0x428   :  { %v901_v18 = vmul.f32 %v2104_v16, %v881_v47  ;;  %v902_v31 = vmul.f32 %v2104_v16, %v882_v45  ;;  %v900_v19 = vmul.f32 %v2104_v16, %v880_v41  ;;  %v903_v32 = vmul.f32 %v2104_v16, %v883_v40  ;;  %v1492_v33 = vpop.f32.mrf.mxu0 }
 0x429   :  { %v977_v45 = vstv %s2771_s4 }
 0x42a   :  { %v921_v44 = vmul.f32 %v2700_v61, %v901_v18  ;;  %v922_v51 = vmul.f32 %v2702_v14, %v902_v31  ;;  %v920_v50 = vmul.f32 %v2706_v25, %v900_v19  ;;  %v923_v52 = vmul.f32 %v2708_v27, %v903_v32 }
 0x42c   :  { %v941_v54 = vadd.f32 %v2704_v7, %v921_v44  ;;  %v940_v4 = vadd.f32 %v2710_v28, %v920_v50  ;;  %v943_v11 = vadd.f32 %v2712_v30, %v923_v52  ;;  %v942_v13 = vadd.f32 %v2714_v5, %v922_v51 }
 0x42e   :  { %v945_v10 = vmax.f32 %v941_v54, 0.0  ;;  %v944_v12 = vmax.f32 %v940_v4, 0.0  ;;  %v946_v15 = vmax.f32 %v942_v13, 0.0  ;;  %v947_v36 = vmax.f32 %v943_v11, 0.0 }
 0x430   :  { %v965_v17 = vmul.f32 %v2716_v21, %v945_v10  ;;  %v964_v43 = vmul.f32 %v2722_v53, %v944_v12  ;;  %v966_v1 = vmul.f32 %v2728_v26, %v946_v15  ;;  %v967_v24 = vmul.f32 %v2732_v56, %v947_v36 }
 0x432   :  { %v968_v62 = vadd.f32 %v965_v17, %v964_v43 }
 0x434   :  { %v969_v22 = vadd.f32 %v968_v62, %v966_v1 }
 0x436   :  { %v970_v34 = vadd.f32 %v969_v22, %v967_v24 }
 0x438   :  { %v971_v37 = vrot.slane %v970_v34, 4 }
 0x43a   :  { %v972_v46 = vadd.f32 %v971_v37, %v970_v34 }
 0x43c   :  { %v973_v38 = vrot.slane %v972_v46, 2 }
 0x43e   :  { %v974_v39 = vadd.f32 %v973_v38, %v972_v46 }
 0x440   :  { %v975_v20 = vrot.slane %v974_v39, 1 }
 0x442   :  { %v976_v40 = vadd.f32 %v975_v20, %v974_v39 }
 0x444   :  { %v978_v41 = vadd.f32 %v977_v45, %v976_v40 }
 0x446   :  { %v979_v47 = vmax.f32 %v978_v41, 0.0 }
 0x448   :  { %980 = vst [vmem:[#allocation9] sm:$0x1] %v979_v47 }
 0x495   :  { %v2033_v2 = vpop.f32.mrf.mxu1 }
 0x496   :  { %v1488_v0 = vadd.f32 %v2047_v48, %v2033_v2 }
 0x497   :  { %v1397_v59 = vpop.f32.mrf.mxu1 }
 0x498   :  { %v1483_v8 = vadd.f32 %v1482_v55, %v1397_v59 }
 0x499   :  { %v2036_v60 = vpop.f32.mrf.mxu1 }
 0x49a   :  { %v1498_v16 = vadd.f32 %v2050_v57, %v2036_v60 }
 0x49b   :  { %v1407_v58 = vpop.f32.mrf.mxu1 }
 0x49c   :  { %v1493_v18 = vadd.f32 %v1492_v33, %v1407_v58 }
 0x49d   :  { %v2061_v35 = vpop.f32.mrf.mxu1 }
 0x49e   :  { %v1599_v3 = vadd.f32 %v2061_v35, %v1488_v0 }
 0x49f   :  { %v1579_v23 = vpop.f32.mrf.mxu1 }
 0x4a0   :  { %v1598_v6 = vadd.f32 %v1579_v23, %v1483_v8  ;;  %v1603_v32 = vadd.f32 %v1599_v3, %v2688_v42 }
 0x4a1   :  { %v2064_v9 = vpop.f32.mrf.mxu1 }
 0x4a2   :  { %v1602_v31 = vadd.f32 %v1598_v6, %v2684_v29  ;;  %v1601_v44 = vadd.f32 %v2064_v9, %v1498_v16 }
 0x4a3   :  { %v1589_v19 = vpop.f32.mrf.mxu1 }
 0x4a4   :  { %v1600_v51 = vadd.f32 %v1589_v19, %v1493_v18  ;;  %v1606_v50 = vadd.f32 %v1603_v32, %v1602_v31  ;;  %v1605_v54 = vadd.f32 %v1601_v44, %v2696_v63 }
 0x4a6   :  { %v1604_v52 = vadd.f32 %v1600_v51, %v2692_v49 }
 0x4a8   :  { %v1607_v4 = vadd.f32 %v1606_v50, %v1604_v52 }
 0x4aa   :  { %v1608_v11 = vadd.f32 %v1607_v4, %v1605_v54 }
 0x4ac   :  { %v1609_v13 = vrot.slane %v1608_v11, 4 }
 0x4ae   :  { %v1610_v10 = vadd.f32 %v1609_v13, %v1608_v11 }
 0x4b0   :  { %v1611_v12 = vrot.slane %v1610_v10, 2 }
 0x4b2   :  { %v1612_v15 = vadd.f32 %v1611_v12, %v1610_v10 }
 0x4b4   :  { %v1613_v36 = vrot.slane %v1612_v15, 1 }
 0x4b6   :  { %v1614_v17 = vadd.f32 %v1613_v36, %v1612_v15 }
 0x4b8   :  { %v1615_v43 = vmul.f32 0.03125, %v1614_v17 }
 0x4ba   :  { %v1616_v29 = vsub.f32 %v1602_v31, %v1615_v43  ;;  %v1617_v62 = vsub.f32 %v1603_v32, %v1615_v43  ;;  %v1618_v1 = vsub.f32 %v1604_v52, %v1615_v43  ;;  %v1619_v42 = vsub.f32 %v1605_v54, %v1615_v43 }
 0x4bc   :  { %v1620_v22 = vmul.f32 %v1616_v29, %v1616_v29  ;;  %v1621_v24 = vmul.f32 %v1617_v62, %v1617_v62  ;;  %v1622_v34 = vmul.f32 %v1618_v1, %v1618_v1  ;;  %v1623_v49 = vmul.f32 %v1619_v42, %v1619_v42 }
 0x4be   :  { %v1624_v37 = vadd.f32 %v1621_v24, %v1620_v22 }
 0x4c0   :  { %v1625_v46 = vadd.f32 %v1624_v37, %v1622_v34 }
 0x4c2   :  { %v1626_v63 = vadd.f32 %v1625_v46, %v1623_v49 }
 0x4c4   :  { %v1627_v38 = vrot.slane %v1626_v63, 4 }
 0x4c6   :  { %v1628_v39 = vadd.f32 %v1627_v38, %v1626_v63 }
 0x4c8   :  { %v1629_v20 = vrot.slane %v1628_v39, 2 }
 0x4ca   :  { %v1630_v40 = vadd.f32 %v1629_v20, %v1628_v39 }
 0x4cc   :  { %v1631_v41 = vrot.slane %v1630_v40, 1 }
 0x4ce   :  { %v1632_v47 = vadd.f32 %v1631_v41, %v1630_v40 }
 0x4d0   :  { %v1633_v48 = vmul.f32 0.03125, %v1632_v47 }
 0x4d2   :  { %v1634_v2 = vadd.f32 1e-05, %v1633_v48 }
 0x4d4   :  { %2105 = vrsqrt.f32 %v1634_v2 }
 0x4e1   :  { %v2106_v59 = vpop.eup %2105 }
 0x4e2   :  { %v1636_v55 = vmul.f32 %v2106_v59, %v1616_v29  ;;  %v1637_v60 = vmul.f32 %v2106_v59, %v1617_v62  ;;  %v1638_v57 = vmul.f32 %v2106_v59, %v1618_v1  ;;  %v1639_v58 = vmul.f32 %v2106_v59, %v1619_v42 }
 0x4e4   :  { %v1640_v35 = vmul.f32 %v1636_v55, %v2706_v25  ;;  %v1641_v0 = vmul.f32 %v1637_v60, %v2700_v61  ;;  %v1642_v8 = vmul.f32 %v1638_v57, %v2702_v14  ;;  %v1643_v33 = vmul.f32 %v1639_v58, %v2708_v27 }
 0x4e6   :  { %v1644_v23 = vadd.f32 %v1640_v35, %v2710_v28  ;;  %v1645_v3 = vadd.f32 %v1641_v0, %v2704_v7  ;;  %v1646_v6 = vadd.f32 %v1642_v8, %v2714_v5  ;;  %v1647_v9 = vadd.f32 %v1643_v33, %v2712_v30 }
 0x4e8   :  { %v1648_v16 = vmax.f32 %v1644_v23, 0.0  ;;  %v1649_v18 = vmax.f32 %v1645_v3, 0.0  ;;  %v1650_v31 = vmax.f32 %v1646_v6, 0.0  ;;  %v1651_v19 = vmax.f32 %v1647_v9, 0.0 }
 0x4ea   :  { %v1652_v25 = vmul.f32 %v1648_v16, %v2722_v53  ;;  %v1653_v61 = vmul.f32 %v1649_v18, %v2716_v21  ;;  %v1654_v14 = vmul.f32 %v1650_v31, %v2728_v26  ;;  %v1655_v27 = vmul.f32 %v1651_v19, %v2732_v56 }
 0x4ec   :  { %v1656_v32 = vadd.f32 %v1653_v61, %v1652_v25 }
 0x4ee   :  { %v1657_v28 = vadd.f32 %v1656_v32, %v1654_v14 }
 0x4f0   :  { %v1658_v44 = vadd.f32 %v1657_v28, %v1655_v27 }
 0x4f2   :  { %v1659_v7 = vrot.slane %v1658_v44, 4 }
 0x4f4   :  { %v1660_v51 = vadd.f32 %v1659_v7, %v1658_v44 }
 0x4f6   :  { %v1661_v5 = vrot.slane %v1660_v51, 2 }
 0x4f8   :  { %v1662_v50 = vadd.f32 %v1661_v5, %v1660_v51 }
 0x4fa   :  { %v1663_v30 = vrot.slane %v1662_v50, 1 }
 0x4fc   :  { %v1664_v52 = vadd.f32 %v1663_v30, %v1662_v50 }
 0x4fe   :  { %v1665_v21 = vadd.f32 %v1664_v52, %v977_v45 }
 0x500   :  { %v1666_v53 = vmax.f32 %v1665_v21, 0.0 }
 0x502   :  { %1668 = vst [vmem:[#allocation9 + $0x1] sm:$0x1] %v1666_v53 }
 0x503   :  { %2178 = shalt.err (!%p2175_p5)
}
 0x504   :  { %s2208_s25 = smov 16  }
 0x505   :  { %1680 = dma.vmem_to_hbm [thread:$0]  %s1675_s21, 32, %s2772_s5, [#allocation5], %s2208_s25, %s2208_s25, %s2198_s0  }
 0x506   :  { %2191 = dma.done.wait [#allocation5], 32  }
 0x507   :  { %2192 = vsyncadd [#allocation5], 4294967264 }
 0x508   :  { %1684 = vsyncpa [#allocation4], 1 }
 0x509   :  { %1685 = vsyncpa [#allocation7], 1 }
 0x50a   :  { %1686 = vsyncpa [#allocation5], 1 }

</bundles_post_ra>
